<compile_context>
chip_gen: v7x
topology: tpu7x:2x2x1
jax: 0.10.0
libtpu: 0.0.40
codegen_flags: <defaults>
</compile_context>

<pallas_src>
from functools import partial

import jax
import jax.numpy as jnp
from jax import lax
from jax.experimental import pallas as pl
from jax.experimental.pallas import tpu as pltpu

LANES = 128   # vreg lane count
STRIP = 128   # accumulator sublane rows processed per scatter strip (16 vregs)


def _rowsum_inv_kernel(rows_ref, attr_ref, inv_ref, acc_ref, *,
                       n_sub, n_chunks, tile_sub):
    """Pass 1: accumulate per-node sums of exp(edge_attr); finalize emits the
    guarded inverse row sums as a lane-dense (n_chunks, 128) table.

    acc_ref is an (n_sub, 128) scratch of per-lane partial sums (node on the
    sublane axis, edge-lane on the lane axis) that lives across the sequential
    ("arbitrary") edge-tile grid axis.  n_sub = ceil(N/8)*8 only.
    """
    step = pl.program_id(0)

    @pl.when(step == 0)
    def _init():
        acc_ref[...] = jnp.zeros_like(acc_ref)

    rows = rows_ref[...]                       # (tile_sub, 128) int32
    e = jnp.exp(attr_ref[...])                 # (tile_sub, 128) f32; pads -> 0

    # Strip-wise masked scatter: per 128-node strip, load the strip once, do
    # tile_sub rank-1 masked updates (cmp+select+add, pure VPU, no relayout),
    # store the strip once.  Bounded live vregs for any N.
    n_strips = -(-n_sub // STRIP)
    for strip in range(n_strips):              # static Python loop (small)
        lo = strip * STRIP
        rs_n = min(STRIP, n_sub - lo)          # multiple of 8
        node_ids = lax.broadcasted_iota(jnp.int32, (rs_n, LANES), 0) + lo
        acc = acc_ref[lo:lo + rs_n, :]         # single load per strip per step
        for s in range(tile_sub):              # static unroll, static slices
            acc = acc + jnp.where(node_ids == rows[s:s + 1, :],
                                  e[s:s + 1, :], 0.0)
        acc_ref[lo:lo + rs_n, :] = acc         # single store per strip per step

    @pl.when(step == pl.num_programs(0) - 1)
    def _finalize():
        # Per 128-node chunk: fold the 128 per-lane partials (XLU lane
        # reduce), relayout sublane->lane with a masked sublane reduce, then
        # compute the guarded reciprocal ONCE (review items 2 & 3).
        for c in range(n_chunks):              # static Python loop (small)
            lo = c * LANES
            rs_n = min(LANES, n_sub - lo)      # >= 8, multiple of 8
            acc_c = acc_ref[lo:lo + rs_n, :]                       # (rs_n,128)
            fold = jnp.sum(acc_c, axis=1, keepdims=True)           # (rs_n, 1)
            sel = (lax.broadcasted_iota(jnp.int32, (rs_n, LANES), 0)
                   == lax.broadcasted_iota(jnp.int32, (rs_n, LANES), 1))
            # rowsum[0, l] = fold[l, 0] for l < rs_n, else 0 (padded nodes).
            rowsum = jnp.sum(jnp.where(sel, fold, 0.0),
                             axis=0, keepdims=True)                # (1, 128)
            # EUP approx reciprocal + one Newton step; zero-degree guard.
            inv0 = pl.reciprocal(rowsum, approx=True)
            inv = inv0 * (2.0 - rowsum * inv0)
            inv_ref[c:c + 1, :] = jnp.where(rowsum > 0.0, inv, 0.0)


def _normalize_kernel(rows_ref, attr_ref, inv_ref, out_ref, *, n_chunks):
    """Pass 2: out = exp(attr) * inv_rowsum[edge_index[0]] (gather + mul only;
    the reciprocal was precomputed in pass 1)."""
    rows = rows_ref[...]                       # (tile_sub, 128) int32
    e = jnp.exp(attr_ref[...])                 # recompute exp: EUP slot is
                                               # free, saves an E-sized HBM trip

    if n_chunks == 1:
        # Specialized single-chunk path: all row ids are < 128 (trusted
        # input), so a direct in-vreg lane gather suffices — no clip / mask /
        # zero init (review item 10).
        table = jnp.broadcast_to(inv_ref[...], rows.shape)        # (tile_sub,128)
        norm = jnp.take_along_axis(table, rows, axis=1)
    else:
        inv = inv_ref[...]                     # (n_chunks, 128) f32, resident
        norm = jnp.zeros_like(e)
        for c in range(n_chunks):              # static unroll over node chunks
            table = jnp.broadcast_to(inv[c:c + 1, :], rows.shape)
            local = rows - c * LANES
            in_chunk = (local >= 0) & (local < LANES)
            idx = jnp.clip(local, 0, LANES - 1)
            g = jnp.take_along_axis(table, idx, axis=1)
            norm = jnp.where(in_chunk, g, norm)

    out_ref[...] = norm * e                    # lane+sublane dense store


def row_softmax(edge_index, edge_attr, N, *, tile_sub=32):
    """Pallas TPU implementation of RowSoftmax.forward(edge_index, edge_attr, N)."""
    N = int(N)
    E = edge_attr.shape[0]
    edge_tile = tile_sub * LANES
    n_e_tiles = max(1, pl.cdiv(E, edge_tile))
    E_pad = n_e_tiles * edge_tile

    # Decoupled paddings (review item 1):
    n_sub = max(8, -(-N // 8) * 8)             # pass-1 accumulator sublanes
    n_chunks = max(1, -(-N // LANES))          # pass-2 gather-table rows

    rows = edge_index[0].astype(jnp.int32)
    attr = edge_attr.astype(jnp.float32)
    pad = E_pad - E
    # Padded edges: valid row id 0 and attr = -1e30 so exp() == 0 exactly —
    # they contribute nothing to any row sum and produce 0 in the output.
    rows_p = jnp.pad(rows, (0, pad), constant_values=0)
    attr_p = jnp.pad(attr, (0, pad), constant_values=-1e30)

    # Lane+sublane dense edge layout: (E_pad // 128, 128)
    rows2d = rows_p.reshape(E_pad // LANES, LANES)
    attr2d = attr_p.reshape(E_pad // LANES, LANES)

    edge_spec = pl.BlockSpec((tile_sub, LANES), lambda i: (i, 0))
    table_spec = pl.BlockSpec((n_chunks, LANES), lambda i: (0, 0))

    # Scoped-VMEM budget: accumulator + double-buffered edge tiles + table
    # (+ headroom).  v5e's default scoped limit is only 16 MiB (review 8/9).
    tile_bytes = tile_sub * LANES * 4
    vmem_needed = n_sub * LANES * 4 + 8 * tile_bytes + n_chunks * LANES * 4 + (2 << 20)
    vmem_limit = int(min(max(vmem_needed, 32 << 20), 128 << 20))

    # ---- pass 1: lane-dense table of guarded 1/rowsum per node -------------
    inv_table = pl.pallas_call(
        partial(_rowsum_inv_kernel, n_sub=n_sub, n_chunks=n_chunks,
                tile_sub=tile_sub),
        out_shape=jax.ShapeDtypeStruct((n_chunks, LANES), jnp.float32),
        grid=(n_e_tiles,),
        in_specs=[edge_spec, edge_spec],
        out_specs=table_spec,
        scratch_shapes=[pltpu.VMEM((n_sub, LANES), jnp.float32)],
        compiler_params=pltpu.CompilerParams(
            dimension_semantics=("arbitrary",),      # reduction over edge tiles
            vmem_limit_bytes=vmem_limit),
    )(rows2d, attr2d)

    # ---- pass 2: out = exp(attr) * inv_table[row] ---------------------------
    out2d = pl.pallas_call(
        partial(_normalize_kernel, n_chunks=n_chunks),
        out_shape=jax.ShapeDtypeStruct((E_pad // LANES, LANES), jnp.float32),
        grid=(n_e_tiles,),
        in_specs=[edge_spec, edge_spec, table_spec],
        out_specs=edge_spec,
        compiler_params=pltpu.CompilerParams(
            dimension_semantics=("parallel",),       # independent edge tiles
            vmem_limit_bytes=vmem_limit),
    )(rows2d, attr2d, inv_table)

    return out2d.reshape(E_pad)[:E]


if __name__ == "__main__":
    key = jax.random.PRNGKey(0)

    def run_case(N, E, case_key):
        k1, k2, k3 = jax.random.split(case_key, 3)
        src = jax.random.randint(k1, (E,), 0, N, dtype=jnp.int32)
        dst = jax.random.randint(k2, (E,), 0, N, dtype=jnp.int32)
        edge_index = jnp.stack([src, dst], axis=0)                  # (2, E)
        edge_attr = jax.random.normal(k3, (E,), dtype=jnp.float32)  # (E,)

        out = jax.block_until_ready(row_softmax(edge_index, edge_attr, N))

        # pure-JAX reference (row-wise softmax without max-subtraction)
        e = jnp.exp(edge_attr)
        rowsum_ref = jax.ops.segment_sum(e, src, num_segments=N)
        ref = e / rowsum_ref[src]

        assert out.shape == (E,) and out.dtype == jnp.float32
        max_err = float(jnp.max(jnp.abs(out - ref)))
        assert jnp.allclose(out, ref, rtol=1e-4, atol=1e-6), \
            f"N={N} E={E} max abs err {max_err}"

    # n_chunks == 1 fast path (37 nodes -> 40-row accumulator), multi-tile edges
    run_case(37, 5000, jax.random.fold_in(key, 0))
    # n_chunks == 2 path (200 nodes -> 200-row accumulator, 2 scatter strips)
    run_case(200, 4500, jax.random.fold_in(key, 1))

    print("KERNEL_OK")
</pallas_src>

<mosaic_0001>
module attributes {stable_mosaic.version = 11 : i64} {
  func.func @_rowsum_inv_kernel(%arg0: i32, %arg1: memref<32x128xi32, #tpu.memory_space<vmem>>, %arg2: memref<32x128xf32, #tpu.memory_space<vmem>>, %arg3: memref<1x128xf32, #tpu.memory_space<vmem>>, %arg4: memref<40x128xf32, #tpu.memory_space<vmem>>) attributes {dimension_semantics = [#tpu.dimension_semantics<arbitrary>], iteration_bounds = array<i64: 2>, scalar_prefetch = 0 : i64, scratch_operands = 1 : i64, tpu.core_type = #tpu.core_type<tc>, window_params = [{transform_indices = @transform_0, window_bounds = array<i64: 32, 128>}, {transform_indices = @transform_1, window_bounds = array<i64: 32, 128>}, {pipeline_mode = #tpu.pipeline_mode<synchronous>, transform_indices = @transform_2, window_bounds = array<i64: 1, 128>}]} {
    %c0_i32 = arith.constant 0 : i32
    %0 = arith.cmpi eq, %arg0, %c0_i32 : i32
    %1 = arith.extui %0 : i1 to i32
    %c0_i32_0 = arith.constant 0 : i32
    %2 = arith.cmpi ne, %1, %c0_i32_0 : i32
    scf.if %2 {
      %cst_41 = arith.constant 0.000000e+00 : f32
      %302 = vector.broadcast %cst_41 : f32 to vector<40x128xf32>
      %c0_42 = arith.constant 0 : index
      %c0_43 = arith.constant 0 : index
      %303 = vector.load %arg4[%c0_42, %c0_43] : memref<40x128xf32, #tpu.memory_space<vmem>>, vector<40x128xf32>
      tpu.vector_store %arg4[%c0_42, %c0_43], %302 {strides = array<i32>} : memref<40x128xf32, #tpu.memory_space<vmem>>, vector<40x128xf32>,
    } else {
    }
    %c0 = arith.constant 0 : index
    %c0_1 = arith.constant 0 : index
    %3 = vector.load %arg1[%c0, %c0_1] : memref<32x128xi32, #tpu.memory_space<vmem>>, vector<32x128xi32>
    %c0_2 = arith.constant 0 : index
    %c0_3 = arith.constant 0 : index
    %4 = vector.load %arg2[%c0_2, %c0_3] : memref<32x128xf32, #tpu.memory_space<vmem>>, vector<32x128xf32>
    %5 = math.exp %4 : vector<32x128xf32>
    %6 = tpu.iota {dimensions = array<i32: 0>} : vector<40x128xi32>
    %c0_i32_4 = arith.constant 0 : i32
    %7 = vector.broadcast %c0_i32_4 : i32 to vector<40x128xi32>
    %8 = arith.addi %6, %7 : vector<40x128xi32>
    %c0_5 = arith.constant 0 : index
    %c0_6 = arith.constant 0 : index
    %9 = vector.load %arg4[%c0_5, %c0_6] : memref<40x128xf32, #tpu.memory_space<vmem>>, vector<40x128xf32>
    %10 = vector.extract_strided_slice %3 {offsets = [0, 0], sizes = [1, 128], strides = [1, 1]} : vector<32x128xi32> to vector<1x128xi32>
    %11 = vector.broadcast %10 : vector<1x128xi32> to vector<40x128xi32>
    %12 = arith.cmpi eq, %8, %11 : vector<40x128xi32>
    %13 = vector.extract_strided_slice %5 {offsets = [0, 0], sizes = [1, 128], strides = [1, 1]} : vector<32x128xf32> to vector<1x128xf32>
    %cst = arith.constant 0.000000e+00 : f32
    %14 = vector.shape_cast %13 : vector<1x128xf32> to vector<1x128xf32>
    %15 = vector.broadcast %14 : vector<1x128xf32> to vector<40x128xf32>
    %16 = vector.broadcast %cst : f32 to vector<40x128xf32>
    %17 = arith.select %12, %15, %16 : vector<40x128xi1>, vector<40x128xf32>
    %18 = arith.addf %9, %17 : vector<40x128xf32>
    %19 = vector.extract_strided_slice %3 {offsets = [1, 0], sizes = [1, 128], strides = [1, 1]} : vector<32x128xi32> to vector<1x128xi32>
    %20 = vector.broadcast %19 : vector<1x128xi32> to vector<40x128xi32>
    %21 = arith.cmpi eq, %8, %20 : vector<40x128xi32>
    %22 = vector.extract_strided_slice %5 {offsets = [1, 0], sizes = [1, 128], strides = [1, 1]} : vector<32x128xf32> to vector<1x128xf32>
    %cst_7 = arith.constant 0.000000e+00 : f32
    %23 = vector.shape_cast %22 : vector<1x128xf32> to vector<1x128xf32>
    %24 = vector.broadcast %23 : vector<1x128xf32> to vector<40x128xf32>
    %25 = vector.broadcast %cst_7 : f32 to vector<40x128xf32>
    %26 = arith.select %21, %24, %25 : vector<40x128xi1>, vector<40x128xf32>
    %27 = arith.addf %18, %26 : vector<40x128xf32>
    %28 = vector.extract_strided_slice %3 {offsets = [2, 0], sizes = [1, 128], strides = [1, 1]} : vector<32x128xi32> to vector<1x128xi32>
    %29 = vector.broadcast %28 : vector<1x128xi32> to vector<40x128xi32>
    %30 = arith.cmpi eq, %8, %29 : vector<40x128xi32>
    %31 = vector.extract_strided_slice %5 {offsets = [2, 0], sizes = [1, 128], strides = [1, 1]} : vector<32x128xf32> to vector<1x128xf32>
    %cst_8 = arith.constant 0.000000e+00 : f32
    %32 = vector.shape_cast %31 : vector<1x128xf32> to vector<1x128xf32>
    %33 = vector.broadcast %32 : vector<1x128xf32> to vector<40x128xf32>
    %34 = vector.broadcast %cst_8 : f32 to vector<40x128xf32>
    %35 = arith.select %30, %33, %34 : vector<40x128xi1>, vector<40x128xf32>
    %36 = arith.addf %27, %35 : vector<40x128xf32>
    %37 = vector.extract_strided_slice %3 {offsets = [3, 0], sizes = [1, 128], strides = [1, 1]} : vector<32x128xi32> to vector<1x128xi32>
    %38 = vector.broadcast %37 : vector<1x128xi32> to vector<40x128xi32>
    %39 = arith.cmpi eq, %8, %38 : vector<40x128xi32>
    %40 = vector.extract_strided_slice %5 {offsets = [3, 0], sizes = [1, 128], strides = [1, 1]} : vector<32x128xf32> to vector<1x128xf32>
    %cst_9 = arith.constant 0.000000e+00 : f32
    %41 = vector.shape_cast %40 : vector<1x128xf32> to vector<1x128xf32>
    %42 = vector.broadcast %41 : vector<1x128xf32> to vector<40x128xf32>
    %43 = vector.broadcast %cst_9 : f32 to vector<40x128xf32>
    %44 = arith.select %39, %42, %43 : vector<40x128xi1>, vector<40x128xf32>
    %45 = arith.addf %36, %44 : vector<40x128xf32>
    %46 = vector.extract_strided_slice %3 {offsets = [4, 0], sizes = [1, 128], strides = [1, 1]} : vector<32x128xi32> to vector<1x128xi32>
    %47 = vector.broadcast %46 : vector<1x128xi32> to vector<40x128xi32>
    %48 = arith.cmpi eq, %8, %47 : vector<40x128xi32>
    %49 = vector.extract_strided_slice %5 {offsets = [4, 0], sizes = [1, 128], strides = [1, 1]} : vector<32x128xf32> to vector<1x128xf32>
    %cst_10 = arith.constant 0.000000e+00 : f32
    %50 = vector.shape_cast %49 : vector<1x128xf32> to vector<1x128xf32>
    %51 = vector.broadcast %50 : vector<1x128xf32> to vector<40x128xf32>
    %52 = vector.broadcast %cst_10 : f32 to vector<40x128xf32>
    %53 = arith.select %48, %51, %52 : vector<40x128xi1>, vector<40x128xf32>
    %54 = arith.addf %45, %53 : vector<40x128xf32>
    %55 = vector.extract_strided_slice %3 {offsets = [5, 0], sizes = [1, 128], strides = [1, 1]} : vector<32x128xi32> to vector<1x128xi32>
    %56 = vector.broadcast %55 : vector<1x128xi32> to vector<40x128xi32>
    %57 = arith.cmpi eq, %8, %56 : vector<40x128xi32>
    %58 = vector.extract_strided_slice %5 {offsets = [5, 0], sizes = [1, 128], strides = [1, 1]} : vector<32x128xf32> to vector<1x128xf32>
    %cst_11 = arith.constant 0.000000e+00 : f32
    %59 = vector.shape_cast %58 : vector<1x128xf32> to vector<1x128xf32>
    %60 = vector.broadcast %59 : vector<1x128xf32> to vector<40x128xf32>
    %61 = vector.broadcast %cst_11 : f32 to vector<40x128xf32>
    %62 = arith.select %57, %60, %61 : vector<40x128xi1>, vector<40x128xf32>
    %63 = arith.addf %54, %62 : vector<40x128xf32>
    %64 = vector.extract_strided_slice %3 {offsets = [6, 0], sizes = [1, 128], strides = [1, 1]} : vector<32x128xi32> to vector<1x128xi32>
    %65 = vector.broadcast %64 : vector<1x128xi32> to vector<40x128xi32>
    %66 = arith.cmpi eq, %8, %65 : vector<40x128xi32>
    %67 = vector.extract_strided_slice %5 {offsets = [6, 0], sizes = [1, 128], strides = [1, 1]} : vector<32x128xf32> to vector<1x128xf32>
    %cst_12 = arith.constant 0.000000e+00 : f32
    %68 = vector.shape_cast %67 : vector<1x128xf32> to vector<1x128xf32>
    %69 = vector.broadcast %68 : vector<1x128xf32> to vector<40x128xf32>
    %70 = vector.broadcast %cst_12 : f32 to vector<40x128xf32>
    %71 = arith.select %66, %69, %70 : vector<40x128xi1>, vector<40x128xf32>
    %72 = arith.addf %63, %71 : vector<40x128xf32>
    %73 = vector.extract_strided_slice %3 {offsets = [7, 0], sizes = [1, 128], strides = [1, 1]} : vector<32x128xi32> to vector<1x128xi32>
    %74 = vector.broadcast %73 : vector<1x128xi32> to vector<40x128xi32>
    %75 = arith.cmpi eq, %8, %74 : vector<40x128xi32>
    %76 = vector.extract_strided_slice %5 {offsets = [7, 0], sizes = [1, 128], strides = [1, 1]} : vector<32x128xf32> to vector<1x128xf32>
    %cst_13 = arith.constant 0.000000e+00 : f32
    %77 = vector.shape_cast %76 : vector<1x128xf32> to vector<1x128xf32>
    %78 = vector.broadcast %77 : vector<1x128xf32> to vector<40x128xf32>
    %79 = vector.broadcast %cst_13 : f32 to vector<40x128xf32>
    %80 = arith.select %75, %78, %79 : vector<40x128xi1>, vector<40x128xf32>
    %81 = arith.addf %72, %80 : vector<40x128xf32>
    %82 = vector.extract_strided_slice %3 {offsets = [8, 0], sizes = [1, 128], strides = [1, 1]} : vector<32x128xi32> to vector<1x128xi32>
    %83 = vector.broadcast %82 : vector<1x128xi32> to vector<40x128xi32>
    %84 = arith.cmpi eq, %8, %83 : vector<40x128xi32>
    %85 = vector.extract_strided_slice %5 {offsets = [8, 0], sizes = [1, 128], strides = [1, 1]} : vector<32x128xf32> to vector<1x128xf32>
    %cst_14 = arith.constant 0.000000e+00 : f32
    %86 = vector.shape_cast %85 : vector<1x128xf32> to vector<1x128xf32>
    %87 = vector.broadcast %86 : vector<1x128xf32> to vector<40x128xf32>
    %88 = vector.broadcast %cst_14 : f32 to vector<40x128xf32>
    %89 = arith.select %84, %87, %88 : vector<40x128xi1>, vector<40x128xf32>
    %90 = arith.addf %81, %89 : vector<40x128xf32>
    %91 = vector.extract_strided_slice %3 {offsets = [9, 0], sizes = [1, 128], strides = [1, 1]} : vector<32x128xi32> to vector<1x128xi32>
    %92 = vector.broadcast %91 : vector<1x128xi32> to vector<40x128xi32>
    %93 = arith.cmpi eq, %8, %92 : vector<40x128xi32>
    %94 = vector.extract_strided_slice %5 {offsets = [9, 0], sizes = [1, 128], strides = [1, 1]} : vector<32x128xf32> to vector<1x128xf32>
    %cst_15 = arith.constant 0.000000e+00 : f32
    %95 = vector.shape_cast %94 : vector<1x128xf32> to vector<1x128xf32>
    %96 = vector.broadcast %95 : vector<1x128xf32> to vector<40x128xf32>
    %97 = vector.broadcast %cst_15 : f32 to vector<40x128xf32>
    %98 = arith.select %93, %96, %97 : vector<40x128xi1>, vector<40x128xf32>
    %99 = arith.addf %90, %98 : vector<40x128xf32>
    %100 = vector.extract_strided_slice %3 {offsets = [10, 0], sizes = [1, 128], strides = [1, 1]} : vector<32x128xi32> to vector<1x128xi32>
    %101 = vector.broadcast %100 : vector<1x128xi32> to vector<40x128xi32>
    %102 = arith.cmpi eq, %8, %101 : vector<40x128xi32>
    %103 = vector.extract_strided_slice %5 {offsets = [10, 0], sizes = [1, 128], strides = [1, 1]} : vector<32x128xf32> to vector<1x128xf32>
    %cst_16 = arith.constant 0.000000e+00 : f32
    %104 = vector.shape_cast %103 : vector<1x128xf32> to vector<1x128xf32>
    %105 = vector.broadcast %104 : vector<1x128xf32> to vector<40x128xf32>
    %106 = vector.broadcast %cst_16 : f32 to vector<40x128xf32>
    %107 = arith.select %102, %105, %106 : vector<40x128xi1>, vector<40x128xf32>
    %108 = arith.addf %99, %107 : vector<40x128xf32>
    %109 = vector.extract_strided_slice %3 {offsets = [11, 0], sizes = [1, 128], strides = [1, 1]} : vector<32x128xi32> to vector<1x128xi32>
    %110 = vector.broadcast %109 : vector<1x128xi32> to vector<40x128xi32>
    %111 = arith.cmpi eq, %8, %110 : vector<40x128xi32>
    %112 = vector.extract_strided_slice %5 {offsets = [11, 0], sizes = [1, 128], strides = [1, 1]} : vector<32x128xf32> to vector<1x128xf32>
    %cst_17 = arith.constant 0.000000e+00 : f32
    %113 = vector.shape_cast %112 : vector<1x128xf32> to vector<1x128xf32>
    %114 = vector.broadcast %113 : vector<1x128xf32> to vector<40x128xf32>
    %115 = vector.broadcast %cst_17 : f32 to vector<40x128xf32>
    %116 = arith.select %111, %114, %115 : vector<40x128xi1>, vector<40x128xf32>
    %117 = arith.addf %108, %116 : vector<40x128xf32>
    %118 = vector.extract_strided_slice %3 {offsets = [12, 0], sizes = [1, 128], strides = [1, 1]} : vector<32x128xi32> to vector<1x128xi32>
    %119 = vector.broadcast %118 : vector<1x128xi32> to vector<40x128xi32>
    %120 = arith.cmpi eq, %8, %119 : vector<40x128xi32>
    %121 = vector.extract_strided_slice %5 {offsets = [12, 0], sizes = [1, 128], strides = [1, 1]} : vector<32x128xf32> to vector<1x128xf32>
    %cst_18 = arith.constant 0.000000e+00 : f32
    %122 = vector.shape_cast %121 : vector<1x128xf32> to vector<1x128xf32>
    %123 = vector.broadcast %122 : vector<1x128xf32> to vector<40x128xf32>
    %124 = vector.broadcast %cst_18 : f32 to vector<40x128xf32>
    %125 = arith.select %120, %123, %124 : vector<40x128xi1>, vector<40x128xf32>
    %126 = arith.addf %117, %125 : vector<40x128xf32>
    %127 = vector.extract_strided_slice %3 {offsets = [13, 0], sizes = [1, 128], strides = [1, 1]} : vector<32x128xi32> to vector<1x128xi32>
    %128 = vector.broadcast %127 : vector<1x128xi32> to vector<40x128xi32>
    %129 = arith.cmpi eq, %8, %128 : vector<40x128xi32>
    %130 = vector.extract_strided_slice %5 {offsets = [13, 0], sizes = [1, 128], strides = [1, 1]} : vector<32x128xf32> to vector<1x128xf32>
    %cst_19 = arith.constant 0.000000e+00 : f32
    %131 = vector.shape_cast %130 : vector<1x128xf32> to vector<1x128xf32>
    %132 = vector.broadcast %131 : vector<1x128xf32> to vector<40x128xf32>
    %133 = vector.broadcast %cst_19 : f32 to vector<40x128xf32>
    %134 = arith.select %129, %132, %133 : vector<40x128xi1>, vector<40x128xf32>
    %135 = arith.addf %126, %134 : vector<40x128xf32>
    %136 = vector.extract_strided_slice %3 {offsets = [14, 0], sizes = [1, 128], strides = [1, 1]} : vector<32x128xi32> to vector<1x128xi32>
    %137 = vector.broadcast %136 : vector<1x128xi32> to vector<40x128xi32>
    %138 = arith.cmpi eq, %8, %137 : vector<40x128xi32>
    %139 = vector.extract_strided_slice %5 {offsets = [14, 0], sizes = [1, 128], strides = [1, 1]} : vector<32x128xf32> to vector<1x128xf32>
    %cst_20 = arith.constant 0.000000e+00 : f32
    %140 = vector.shape_cast %139 : vector<1x128xf32> to vector<1x128xf32>
    %141 = vector.broadcast %140 : vector<1x128xf32> to vector<40x128xf32>
    %142 = vector.broadcast %cst_20 : f32 to vector<40x128xf32>
    %143 = arith.select %138, %141, %142 : vector<40x128xi1>, vector<40x128xf32>
    %144 = arith.addf %135, %143 : vector<40x128xf32>
    %145 = vector.extract_strided_slice %3 {offsets = [15, 0], sizes = [1, 128], strides = [1, 1]} : vector<32x128xi32> to vector<1x128xi32>
    %146 = vector.broadcast %145 : vector<1x128xi32> to vector<40x128xi32>
    %147 = arith.cmpi eq, %8, %146 : vector<40x128xi32>
    %148 = vector.extract_strided_slice %5 {offsets = [15, 0], sizes = [1, 128], strides = [1, 1]} : vector<32x128xf32> to vector<1x128xf32>
    %cst_21 = arith.constant 0.000000e+00 : f32
    %149 = vector.shape_cast %148 : vector<1x128xf32> to vector<1x128xf32>
    %150 = vector.broadcast %149 : vector<1x128xf32> to vector<40x128xf32>
    %151 = vector.broadcast %cst_21 : f32 to vector<40x128xf32>
    %152 = arith.select %147, %150, %151 : vector<40x128xi1>, vector<40x128xf32>
    %153 = arith.addf %144, %152 : vector<40x128xf32>
    %154 = vector.extract_strided_slice %3 {offsets = [16, 0], sizes = [1, 128], strides = [1, 1]} : vector<32x128xi32> to vector<1x128xi32>
    %155 = vector.broadcast %154 : vector<1x128xi32> to vector<40x128xi32>
    %156 = arith.cmpi eq, %8, %155 : vector<40x128xi32>
    %157 = vector.extract_strided_slice %5 {offsets = [16, 0], sizes = [1, 128], strides = [1, 1]} : vector<32x128xf32> to vector<1x128xf32>
    %cst_22 = arith.constant 0.000000e+00 : f32
    %158 = vector.shape_cast %157 : vector<1x128xf32> to vector<1x128xf32>
    %159 = vector.broadcast %158 : vector<1x128xf32> to vector<40x128xf32>
    %160 = vector.broadcast %cst_22 : f32 to vector<40x128xf32>
    %161 = arith.select %156, %159, %160 : vector<40x128xi1>, vector<40x128xf32>
    %162 = arith.addf %153, %161 : vector<40x128xf32>
    %163 = vector.extract_strided_slice %3 {offsets = [17, 0], sizes = [1, 128], strides = [1, 1]} : vector<32x128xi32> to vector<1x128xi32>
    %164 = vector.broadcast %163 : vector<1x128xi32> to vector<40x128xi32>
    %165 = arith.cmpi eq, %8, %164 : vector<40x128xi32>
    %166 = vector.extract_strided_slice %5 {offsets = [17, 0], sizes = [1, 128], strides = [1, 1]} : vector<32x128xf32> to vector<1x128xf32>
    %cst_23 = arith.constant 0.000000e+00 : f32
    %167 = vector.shape_cast %166 : vector<1x128xf32> to vector<1x128xf32>
    %168 = vector.broadcast %167 : vector<1x128xf32> to vector<40x128xf32>
    %169 = vector.broadcast %cst_23 : f32 to vector<40x128xf32>
    %170 = arith.select %165, %168, %169 : vector<40x128xi1>, vector<40x128xf32>
    %171 = arith.addf %162, %170 : vector<40x128xf32>
    %172 = vector.extract_strided_slice %3 {offsets = [18, 0], sizes = [1, 128], strides = [1, 1]} : vector<32x128xi32> to vector<1x128xi32>
    %173 = vector.broadcast %172 : vector<1x128xi32> to vector<40x128xi32>
    %174 = arith.cmpi eq, %8, %173 : vector<40x128xi32>
    %175 = vector.extract_strided_slice %5 {offsets = [18, 0], sizes = [1, 128], strides = [1, 1]} : vector<32x128xf32> to vector<1x128xf32>
    %cst_24 = arith.constant 0.000000e+00 : f32
    %176 = vector.shape_cast %175 : vector<1x128xf32> to vector<1x128xf32>
    %177 = vector.broadcast %176 : vector<1x128xf32> to vector<40x128xf32>
    %178 = vector.broadcast %cst_24 : f32 to vector<40x128xf32>
    %179 = arith.select %174, %177, %178 : vector<40x128xi1>, vector<40x128xf32>
    %180 = arith.addf %171, %179 : vector<40x128xf32>
    %181 = vector.extract_strided_slice %3 {offsets = [19, 0], sizes = [1, 128], strides = [1, 1]} : vector<32x128xi32> to vector<1x128xi32>
    %182 = vector.broadcast %181 : vector<1x128xi32> to vector<40x128xi32>
    %183 = arith.cmpi eq, %8, %182 : vector<40x128xi32>
    %184 = vector.extract_strided_slice %5 {offsets = [19, 0], sizes = [1, 128], strides = [1, 1]} : vector<32x128xf32> to vector<1x128xf32>
    %cst_25 = arith.constant 0.000000e+00 : f32
    %185 = vector.shape_cast %184 : vector<1x128xf32> to vector<1x128xf32>
    %186 = vector.broadcast %185 : vector<1x128xf32> to vector<40x128xf32>
    %187 = vector.broadcast %cst_25 : f32 to vector<40x128xf32>
    %188 = arith.select %183, %186, %187 : vector<40x128xi1>, vector<40x128xf32>
    %189 = arith.addf %180, %188 : vector<40x128xf32>
    %190 = vector.extract_strided_slice %3 {offsets = [20, 0], sizes = [1, 128], strides = [1, 1]} : vector<32x128xi32> to vector<1x128xi32>
    %191 = vector.broadcast %190 : vector<1x128xi32> to vector<40x128xi32>
    %192 = arith.cmpi eq, %8, %191 : vector<40x128xi32>
    %193 = vector.extract_strided_slice %5 {offsets = [20, 0], sizes = [1, 128], strides = [1, 1]} : vector<32x128xf32> to vector<1x128xf32>
    %cst_26 = arith.constant 0.000000e+00 : f32
    %194 = vector.shape_cast %193 : vector<1x128xf32> to vector<1x128xf32>
    %195 = vector.broadcast %194 : vector<1x128xf32> to vector<40x128xf32>
    %196 = vector.broadcast %cst_26 : f32 to vector<40x128xf32>
    %197 = arith.select %192, %195, %196 : vector<40x128xi1>, vector<40x128xf32>
    %198 = arith.addf %189, %197 : vector<40x128xf32>
    %199 = vector.extract_strided_slice %3 {offsets = [21, 0], sizes = [1, 128], strides = [1, 1]} : vector<32x128xi32> to vector<1x128xi32>
    %200 = vector.broadcast %199 : vector<1x128xi32> to vector<40x128xi32>
    %201 = arith.cmpi eq, %8, %200 : vector<40x128xi32>
    %202 = vector.extract_strided_slice %5 {offsets = [21, 0], sizes = [1, 128], strides = [1, 1]} : vector<32x128xf32> to vector<1x128xf32>
    %cst_27 = arith.constant 0.000000e+00 : f32
    %203 = vector.shape_cast %202 : vector<1x128xf32> to vector<1x128xf32>
    %204 = vector.broadcast %203 : vector<1x128xf32> to vector<40x128xf32>
    %205 = vector.broadcast %cst_27 : f32 to vector<40x128xf32>
    %206 = arith.select %201, %204, %205 : vector<40x128xi1>, vector<40x128xf32>
    %207 = arith.addf %198, %206 : vector<40x128xf32>
    %208 = vector.extract_strided_slice %3 {offsets = [22, 0], sizes = [1, 128], strides = [1, 1]} : vector<32x128xi32> to vector<1x128xi32>
    %209 = vector.broadcast %208 : vector<1x128xi32> to vector<40x128xi32>
    %210 = arith.cmpi eq, %8, %209 : vector<40x128xi32>
    %211 = vector.extract_strided_slice %5 {offsets = [22, 0], sizes = [1, 128], strides = [1, 1]} : vector<32x128xf32> to vector<1x128xf32>
    %cst_28 = arith.constant 0.000000e+00 : f32
    %212 = vector.shape_cast %211 : vector<1x128xf32> to vector<1x128xf32>
    %213 = vector.broadcast %212 : vector<1x128xf32> to vector<40x128xf32>
    %214 = vector.broadcast %cst_28 : f32 to vector<40x128xf32>
    %215 = arith.select %210, %213, %214 : vector<40x128xi1>, vector<40x128xf32>
    %216 = arith.addf %207, %215 : vector<40x128xf32>
    %217 = vector.extract_strided_slice %3 {offsets = [23, 0], sizes = [1, 128], strides = [1, 1]} : vector<32x128xi32> to vector<1x128xi32>
    %218 = vector.broadcast %217 : vector<1x128xi32> to vector<40x128xi32>
    %219 = arith.cmpi eq, %8, %218 : vector<40x128xi32>
    %220 = vector.extract_strided_slice %5 {offsets = [23, 0], sizes = [1, 128], strides = [1, 1]} : vector<32x128xf32> to vector<1x128xf32>
    %cst_29 = arith.constant 0.000000e+00 : f32
    %221 = vector.shape_cast %220 : vector<1x128xf32> to vector<1x128xf32>
    %222 = vector.broadcast %221 : vector<1x128xf32> to vector<40x128xf32>
    %223 = vector.broadcast %cst_29 : f32 to vector<40x128xf32>
    %224 = arith.select %219, %222, %223 : vector<40x128xi1>, vector<40x128xf32>
    %225 = arith.addf %216, %224 : vector<40x128xf32>
    %226 = vector.extract_strided_slice %3 {offsets = [24, 0], sizes = [1, 128], strides = [1, 1]} : vector<32x128xi32> to vector<1x128xi32>
    %227 = vector.broadcast %226 : vector<1x128xi32> to vector<40x128xi32>
    %228 = arith.cmpi eq, %8, %227 : vector<40x128xi32>
    %229 = vector.extract_strided_slice %5 {offsets = [24, 0], sizes = [1, 128], strides = [1, 1]} : vector<32x128xf32> to vector<1x128xf32>
    %cst_30 = arith.constant 0.000000e+00 : f32
    %230 = vector.shape_cast %229 : vector<1x128xf32> to vector<1x128xf32>
    %231 = vector.broadcast %230 : vector<1x128xf32> to vector<40x128xf32>
    %232 = vector.broadcast %cst_30 : f32 to vector<40x128xf32>
    %233 = arith.select %228, %231, %232 : vector<40x128xi1>, vector<40x128xf32>
    %234 = arith.addf %225, %233 : vector<40x128xf32>
    %235 = vector.extract_strided_slice %3 {offsets = [25, 0], sizes = [1, 128], strides = [1, 1]} : vector<32x128xi32> to vector<1x128xi32>
    %236 = vector.broadcast %235 : vector<1x128xi32> to vector<40x128xi32>
    %237 = arith.cmpi eq, %8, %236 : vector<40x128xi32>
    %238 = vector.extract_strided_slice %5 {offsets = [25, 0], sizes = [1, 128], strides = [1, 1]} : vector<32x128xf32> to vector<1x128xf32>
    %cst_31 = arith.constant 0.000000e+00 : f32
    %239 = vector.shape_cast %238 : vector<1x128xf32> to vector<1x128xf32>
    %240 = vector.broadcast %239 : vector<1x128xf32> to vector<40x128xf32>
    %241 = vector.broadcast %cst_31 : f32 to vector<40x128xf32>
    %242 = arith.select %237, %240, %241 : vector<40x128xi1>, vector<40x128xf32>
    %243 = arith.addf %234, %242 : vector<40x128xf32>
    %244 = vector.extract_strided_slice %3 {offsets = [26, 0], sizes = [1, 128], strides = [1, 1]} : vector<32x128xi32> to vector<1x128xi32>
    %245 = vector.broadcast %244 : vector<1x128xi32> to vector<40x128xi32>
    %246 = arith.cmpi eq, %8, %245 : vector<40x128xi32>
    %247 = vector.extract_strided_slice %5 {offsets = [26, 0], sizes = [1, 128], strides = [1, 1]} : vector<32x128xf32> to vector<1x128xf32>
    %cst_32 = arith.constant 0.000000e+00 : f32
    %248 = vector.shape_cast %247 : vector<1x128xf32> to vector<1x128xf32>
    %249 = vector.broadcast %248 : vector<1x128xf32> to vector<40x128xf32>
    %250 = vector.broadcast %cst_32 : f32 to vector<40x128xf32>
    %251 = arith.select %246, %249, %250 : vector<40x128xi1>, vector<40x128xf32>
    %252 = arith.addf %243, %251 : vector<40x128xf32>
    %253 = vector.extract_strided_slice %3 {offsets = [27, 0], sizes = [1, 128], strides = [1, 1]} : vector<32x128xi32> to vector<1x128xi32>
    %254 = vector.broadcast %253 : vector<1x128xi32> to vector<40x128xi32>
    %255 = arith.cmpi eq, %8, %254 : vector<40x128xi32>
    %256 = vector.extract_strided_slice %5 {offsets = [27, 0], sizes = [1, 128], strides = [1, 1]} : vector<32x128xf32> to vector<1x128xf32>
    %cst_33 = arith.constant 0.000000e+00 : f32
    %257 = vector.shape_cast %256 : vector<1x128xf32> to vector<1x128xf32>
    %258 = vector.broadcast %257 : vector<1x128xf32> to vector<40x128xf32>
    %259 = vector.broadcast %cst_33 : f32 to vector<40x128xf32>
    %260 = arith.select %255, %258, %259 : vector<40x128xi1>, vector<40x128xf32>
    %261 = arith.addf %252, %260 : vector<40x128xf32>
    %262 = vector.extract_strided_slice %3 {offsets = [28, 0], sizes = [1, 128], strides = [1, 1]} : vector<32x128xi32> to vector<1x128xi32>
    %263 = vector.broadcast %262 : vector<1x128xi32> to vector<40x128xi32>
    %264 = arith.cmpi eq, %8, %263 : vector<40x128xi32>
    %265 = vector.extract_strided_slice %5 {offsets = [28, 0], sizes = [1, 128], strides = [1, 1]} : vector<32x128xf32> to vector<1x128xf32>
    %cst_34 = arith.constant 0.000000e+00 : f32
    %266 = vector.shape_cast %265 : vector<1x128xf32> to vector<1x128xf32>
    %267 = vector.broadcast %266 : vector<1x128xf32> to vector<40x128xf32>
    %268 = vector.broadcast %cst_34 : f32 to vector<40x128xf32>
    %269 = arith.select %264, %267, %268 : vector<40x128xi1>, vector<40x128xf32>
    %270 = arith.addf %261, %269 : vector<40x128xf32>
    %271 = vector.extract_strided_slice %3 {offsets = [29, 0], sizes = [1, 128], strides = [1, 1]} : vector<32x128xi32> to vector<1x128xi32>
    %272 = vector.broadcast %271 : vector<1x128xi32> to vector<40x128xi32>
    %273 = arith.cmpi eq, %8, %272 : vector<40x128xi32>
    %274 = vector.extract_strided_slice %5 {offsets = [29, 0], sizes = [1, 128], strides = [1, 1]} : vector<32x128xf32> to vector<1x128xf32>
    %cst_35 = arith.constant 0.000000e+00 : f32
    %275 = vector.shape_cast %274 : vector<1x128xf32> to vector<1x128xf32>
    %276 = vector.broadcast %275 : vector<1x128xf32> to vector<40x128xf32>
    %277 = vector.broadcast %cst_35 : f32 to vector<40x128xf32>
    %278 = arith.select %273, %276, %277 : vector<40x128xi1>, vector<40x128xf32>
    %279 = arith.addf %270, %278 : vector<40x128xf32>
    %280 = vector.extract_strided_slice %3 {offsets = [30, 0], sizes = [1, 128], strides = [1, 1]} : vector<32x128xi32> to vector<1x128xi32>
    %281 = vector.broadcast %280 : vector<1x128xi32> to vector<40x128xi32>
    %282 = arith.cmpi eq, %8, %281 : vector<40x128xi32>
    %283 = vector.extract_strided_slice %5 {offsets = [30, 0], sizes = [1, 128], strides = [1, 1]} : vector<32x128xf32> to vector<1x128xf32>
    %cst_36 = arith.constant 0.000000e+00 : f32
    %284 = vector.shape_cast %283 : vector<1x128xf32> to vector<1x128xf32>
    %285 = vector.broadcast %284 : vector<1x128xf32> to vector<40x128xf32>
    %286 = vector.broadcast %cst_36 : f32 to vector<40x128xf32>
    %287 = arith.select %282, %285, %286 : vector<40x128xi1>, vector<40x128xf32>
    %288 = arith.addf %279, %287 : vector<40x128xf32>
    %289 = vector.extract_strided_slice %3 {offsets = [31, 0], sizes = [1, 128], strides = [1, 1]} : vector<32x128xi32> to vector<1x128xi32>
    %290 = vector.broadcast %289 : vector<1x128xi32> to vector<40x128xi32>
    %291 = arith.cmpi eq, %8, %290 : vector<40x128xi32>
    %292 = vector.extract_strided_slice %5 {offsets = [31, 0], sizes = [1, 128], strides = [1, 1]} : vector<32x128xf32> to vector<1x128xf32>
    %cst_37 = arith.constant 0.000000e+00 : f32
    %293 = vector.shape_cast %292 : vector<1x128xf32> to vector<1x128xf32>
    %294 = vector.broadcast %293 : vector<1x128xf32> to vector<40x128xf32>
    %295 = vector.broadcast %cst_37 : f32 to vector<40x128xf32>
    %296 = arith.select %291, %294, %295 : vector<40x128xi1>, vector<40x128xf32>
    %297 = arith.addf %288, %296 : vector<40x128xf32>
    %c0_38 = arith.constant 0 : index
    %c0_39 = arith.constant 0 : index
    %298 = vector.load %arg4[%c0_38, %c0_39] : memref<40x128xf32, #tpu.memory_space<vmem>>, vector<40x128xf32>
    tpu.vector_store %arg4[%c0_38, %c0_39], %297 {strides = array<i32>} : memref<40x128xf32, #tpu.memory_space<vmem>>, vector<40x128xf32>,
    %c1_i32 = arith.constant 1 : i32
    %299 = arith.cmpi eq, %arg0, %c1_i32 : i32
    %300 = arith.extui %299 : i1 to i32
    %c0_i32_40 = arith.constant 0 : i32
    %301 = arith.cmpi ne, %300, %c0_i32_40 : i32
    scf.if %301 {
      %c0_41 = arith.constant 0 : index
      %c0_42 = arith.constant 0 : index
      %302 = vector.load %arg4[%c0_41, %c0_42] : memref<40x128xf32, #tpu.memory_space<vmem>>, vector<40x128xf32>
      %cst_43 = arith.constant dense<0.000000e+00> : vector<40xf32>
      %303 = vector.multi_reduction <add>, %302, %cst_43 [1] : vector<40x128xf32> to vector<40xf32>
      %304 = vector.shape_cast %303 : vector<40xf32> to vector<40x1xf32>
      %305 = tpu.iota {dimensions = array<i32: 0>} : vector<40x128xi32>
      %306 = tpu.iota {dimensions = array<i32: 1>} : vector<40x128xi32>
      %307 = arith.cmpi eq, %305, %306 : vector<40x128xi32>
      %cst_44 = arith.constant 0.000000e+00 : f32
      %308 = vector.shape_cast %304 : vector<40x1xf32> to vector<40x1xf32>
      %309 = vector.broadcast %308 : vector<40x1xf32> to vector<40x128xf32>
      %310 = vector.broadcast %cst_44 : f32 to vector<40x128xf32>
      %311 = arith.select %307, %309, %310 : vector<40x128xi1>, vector<40x128xf32>
      %cst_45 = arith.constant dense<0.000000e+00> : vector<128xf32>
      %312 = vector.multi_reduction <add>, %311, %cst_45 [0] : vector<40x128xf32> to vector<128xf32>
      %313 = vector.shape_cast %312 : vector<128xf32> to vector<1x128xf32>
      %314 = tpu.reciprocal %313 {approx = true} : vector<1x128xf32> -> vector<1x128xf32>
      %315 = arith.mulf %313, %314 : vector<1x128xf32>
      %cst_46 = arith.constant 2.000000e+00 : f32
      %316 = vector.broadcast %cst_46 : f32 to vector<1x128xf32>
      %317 = arith.subf %316, %315 : vector<1x128xf32>
      %318 = arith.mulf %314, %317 : vector<1x128xf32>
      %cst_47 = arith.constant 0.000000e+00 : f32
      %319 = vector.broadcast %cst_47 : f32 to vector<1x128xf32>
      %320 = arith.cmpf ogt, %313, %319 : vector<1x128xf32>
      %cst_48 = arith.constant 0.000000e+00 : f32
      %321 = vector.broadcast %cst_48 : f32 to vector<1x128xf32>
      %322 = arith.select %320, %318, %321 : vector<1x128xi1>, vector<1x128xf32>
      %c0_49 = arith.constant 0 : index
      %c0_50 = arith.constant 0 : index
      %323 = vector.load %arg3[%c0_49, %c0_50] : memref<1x128xf32, #tpu.memory_space<vmem>>, vector<1x128xf32>
      tpu.vector_store %arg3[%c0_49, %c0_50], %322 {strides = array<i32>} : memref<1x128xf32, #tpu.memory_space<vmem>>, vector<1x128xf32>,
    } else {
    }
    return
  }
  func.func @transform_0(%arg0: i32) -> (i32, i32) {
    %c0_i32 = arith.constant 0 : i32
    %c0_i32_0 = arith.constant 0 : i32
    return %arg0, %c0_i32 : i32, i32
  }
  func.func @transform_1(%arg0: i32) -> (i32, i32) {
    %c0_i32 = arith.constant 0 : i32
    %c0_i32_0 = arith.constant 0 : i32
    return %arg0, %c0_i32 : i32, i32
  }
  func.func @transform_2(%arg0: i32) -> (i32, i32) {
    %c0_i32 = arith.constant 0 : i32
    %c0_i32_0 = arith.constant 0 : i32
    %c0_i32_1 = arith.constant 0 : i32
    return %c0_i32, %c0_i32_0 : i32, i32
  }
}

</mosaic_0001>

<bundles_post_ra>
// kernel: tpu_custom_call.1
= control target key start
LH: loop header
LB: loop body
LE: loop exit
PB: predicated region body
PF: predicated region fallthrough
CT: control target
= control target key end

     0   :  { %7 = vsyncpa [#allocation4], 0  ;;  %s1958_s0 = inlined_call_operand.hbm [shape: s32[64,128], index: 0, kind: input, shape index: {}]   ;;  %s1959_s1 = inlined_call_operand.hbm [shape: f32[64,128], index: 1, kind: input, shape index: {}]   ;;  %s1960_s2 = inlined_call_operand.hbm [shape: f32[1,128], index: 2, kind: output, shape index: {}]  }
   0x1   :  { %9 = vsyncpa [#allocation4 + $0x1], 0 }
   0x2   :  { %10 = vsyncpa [#allocation7], 0 }
   0x3   :  { %12 = vsyncpa [#allocation7 + $0x1], 0 }
   0x4   :  { %13 = vsyncpa [#allocation5], 0  ;;  %s1332_s9 = smov 0   ;;  %s1334_s10 = smov 0  }
   0x5   :  { %s1336_s11 = smov 0   ;;  %s1338_s12 = smov 0  }
   0x6 LB: > { %s1351_s13 = sadd.s32 4294967295, %s1309_s12   ;;  %s1354_s14 = sadd.s32 1, %s1309_s12   ;;  %s1309_s12 = sphi %s1338_s12, %s1974_s12   ;;  %s1305_s11 = sphi %s1336_s11, %s1973_s11   ;;  %s1301_s10 = sphi %s1334_s10, %s1972_s10   ;;  %s1297_s9 = sphi %s1332_s9, %s1971_s9  }
   0x7   : > { %s23_s15 = ssub.s32 %s1309_s12, %s1354_s14  ;;  %s26_s16 = sadd.s32 1, %s1305_s11 }
   0x8   : > { %p24_p0 = scmp.eq.s32.totalorder %s23_s15, 0  ;;  %p33_p1 = scmp.ne.s32.totalorder %s1305_s11, %s1301_s10 }
   0x9   : > { %p34_p2 = scmp.eq.s32.totalorder %s1309_s12, 0  ;;  %p39_p3 = scmp.ne.s32.totalorder %s1301_s10, %s1297_s9 }
   0xa   : > { %s1364_s17 = scalar_select %p24_p0, %s1305_s11, %s26_s16  }
   0xb   : > { %p35_p4 = por %p34_p2, %p33_p1  ;;  %p40_p5 = scmp.eq.s32.totalorder %s1351_s13, 0 }
   0xc   : > { %p1132_p6 = scmp.lt.s32.totalorder %s1309_s12, 2  ;;  %s1373_s19 = sand.u32 1, %s1305_s11  }
   0xd   : > { %p1368_p7 = por %p40_p5, %p39_p3  ;;  %s1100_s20 = sshll.u32 %s1373_s19, 5 }
   0xe   : > { %s1115_s21 = sshll.u32 %s1309_s12, 9  ;;  %s114_s25 = scalar_lea.vmem [#allocation3], %s1100_s20 }
   0xf   : > { %s1962_s18 = scalar_select %p1368_p7, 1, 0 }
  0x10   : > { %s1382_s24 = scalar_lea.hbm %s1958_s0, %s1115_s21  ;;  %s121_s26 = sshll.u32 %s114_s25, 4  ;;  %s1386_s26 = int_to_ptr.vmem [resolvable:$true] %s121_s26 }
  0x11   : > { %p1388_p8 = pnand %p1132_p6, %p35_p4  ;;  %s111_s28 = scalar_lea.sflag [#allocation4], %s1373_s19 }
  0x12   : > { %s1181_s29 = scalar_lea.hbm %s1382_s24, 512  ;;  %s1186_s4 = scalar_lea.hbm %s1958_s0, 1024 }
  0x13   : > { %p1182_p10 = scmp.ne.s32.totalorder %s1382_s24, %s1181_s29  ;;  %p1183_p11 = pneg %p1388_p8 }
  0x14   : > { %p1187_p0 = scmp.lt.u32.totalorder %s1382_s24, %s1958_s0  ;;  %p1188_p1 = scmp.lt.u32.totalorder %s1186_s4, %s1181_s29 }
  0x15   : > { %p1184_p12 = pnand %p1183_p11, %p1182_p10  ;;  %p1190_p3 = scmp.lt.u32.totalorder %s1181_s29, %s1382_s24 }
  0x16   : > { %p1189_p2 = por %p1188_p1, %p1187_p0 }
  0x17   : > { %p1185_p13 = pneg %p1184_p12 }
  0x18   : > { %p1191_p4 = por %p1190_p3, %p1189_p2 }
  0x1a   : > { %p1192_p5 = pnand %p1191_p4, %p1185_p13 }
  0x1c   : > { %1195 = shalt.err (!%p1192_p5)
}
  0x1d   : > { %s1196_s7 = scalar_lea.vmem %s1386_s26, 512  ;;  %s1311_s8 = smov [#allocation3]  }
  0x1e   : > { %p1197_p6 = scmp.ne.s32.totalorder %s1386_s26, %s1196_s7  ;;  %s1201_s9 = sshll.u32 %s1311_s8, 4  ;;  %s1202_s9 = int_to_ptr.vmem [resolvable:$false] %s1201_s9 }
  0x1f   : > { %s1203_s15 = scalar_lea.vmem %s1202_s9, 1024  ;;  %p1204_p9 = scmp.lt.s32.totalorder %s1386_s26, %s1202_s9 }
  0x20   : > { %p1199_p10 = pnand %p1197_p6, %p1183_p11  ;;  %p1205_p0 = scmp.lt.s32.totalorder %s1203_s15, %s1196_s7 }
  0x22   : > { %p1200_p12 = pneg %p1199_p10  ;;  %p1206_p1 = por %p1205_p0, %p1204_p9 }
  0x24   : > { %p1207_p2 = pnand %p1206_p1, %p1200_p12 }
  0x26   : > { %1210 = shalt.err (!%p1207_p2)
}
  0x27   : > { %s1312_s16 = smov 128   ;;  %s1313_s22 = smov 8  }
  0x28   : > { %1128 = dma.hbm_to_vmem [thread:$0]  (!%p1388_p8), %s1382_s24, 512, %s1386_s26, %s111_s28, %s1312_s16, %s1312_s16, %s1313_s22  }
  0x29   : > { %p150_p9 = scmp.lt.s32.totalorder %s1309_s12, 3  ;;  %s1430_s29 = scalar_lea.hbm %s1959_s1, %s1115_s21 }
  0x2a   : > { %p1964_p13 = scmp.ge.s32.totalorder %s1309_s12, 1  ;;  %s135_s3 = scalar_lea.vmem [#allocation6], %s1100_s20 }
  0x2b   : > { %s142_s4 = sshll.u32 %s135_s3, 4  ;;  %s132_s24 = scalar_lea.sflag [#allocation7], %s1373_s19  ;;  %s1440_s4 = int_to_ptr.vmem [resolvable:$true] %s142_s4 }
  0x2c   : > { %p1434_p3 = pnand %p1964_p13, %p150_p9  ;;  %s1211_s26 = scalar_lea.hbm %s1430_s29, 512 }
  0x2d   : > { %p1212_p4 = scmp.ne.s32.totalorder %s1430_s29, %s1211_s26  ;;  %s1216_s28 = scalar_lea.hbm %s1959_s1, 1024 }
  0x2e   : > { %p1217_p10 = scmp.lt.u32.totalorder %s1430_s29, %s1959_s1  ;;  %p1218_p12 = scmp.lt.u32.totalorder %s1216_s28, %s1211_s26 }
  0x2f   : > { %p1214_p5 = pnand %p1212_p4, %p1183_p11  ;;  %p1220_p1 = scmp.lt.u32.totalorder %s1211_s26, %s1430_s29 }
  0x30   : > { %p1219_p0 = por %p1218_p12, %p1217_p10 }
  0x31   : > { %p1215_p6 = pneg %p1214_p5 }
  0x32   : > { %p1221_p2 = por %p1220_p1, %p1219_p0 }
  0x34   : > { %p1222_p9 = pnand %p1221_p2, %p1215_p6 }
  0x36   : > { %1225 = shalt.err (!%p1222_p9)
}
  0x37   : > { %s1226_s20 = scalar_lea.vmem %s1440_s4, 512  ;;  %s1314_s7 = smov [#allocation6]  }
  0x38   : > { %p1227_p13 = scmp.ne.s32.totalorder %s1440_s4, %s1226_s20  ;;  %s1231_s8 = sshll.u32 %s1314_s7, 4  ;;  %s1232_s8 = int_to_ptr.vmem [resolvable:$false] %s1231_s8 }
  0x39   : > { %s1233_s9 = scalar_lea.vmem %s1232_s8, 1024  ;;  %p1234_p7 = scmp.lt.s32.totalorder %s1440_s4, %s1232_s8 }
  0x3a   : > { %p1229_p4 = pnand %p1227_p13, %p1183_p11  ;;  %p1235_p10 = scmp.lt.s32.totalorder %s1233_s9, %s1226_s20 }
  0x3c   : > { %p1230_p5 = pneg %p1229_p4  ;;  %p1236_p12 = por %p1235_p10, %p1234_p7 }
  0x3e   : > { %p1237_p0 = pnand %p1236_p12, %p1230_p5 }
  0x40   : > { %1240 = shalt.err (!%p1237_p0)
}
  0x41   : > { %1131 = dma.hbm_to_vmem [thread:$0]  (!%p1388_p8), %s1430_s29, 512, %s1440_s4, %s132_s24, %s1312_s16, %s1312_s16, %s1313_s22  }
  0x42   : > { %154 = sbr.rel (%p1434_p3) target bundleno = 451 (0x1c3), region = 28  ;;  %s156_s15 = sand.u32 (!%p1434_p3), 1, %s1301_s10  }
  0x43   : > { %s1107_s23 = sshll.u32 (!%p1434_p3), %s156_s15, 5  ;;  %s157_s25 = scalar_lea.sflag (!%p1434_p3), [#allocation4], %s156_s15 }
  0x44   : > { %s1474_s3 = scalar_lea.vmem (!%p1434_p3), [#allocation3], %s1107_s23  ;;  %p1966_p7 = scmp.ne.s32.totalorder (!%p1434_p3), %s1962_s18, 0 }
  0x49   : > { %1284 = dma.done.wait (%p1966_p7), %s157_s25, 512  }
  0x4a   : > { %1286 = vsyncadd (%p1966_p7), %s157_s25, 4294966784  ;;  %s166_s19 = scalar_lea.sflag [#allocation7], %s156_s15  ;;  %s169_s27 = scalar_lea.vmem [#allocation6], %s1107_s23 }
  0x4b   : > { %1288 = dma.done.wait (%p1966_p7), %s166_s19, 512  }
  0x4c   : > { %1290 = vsyncadd (%p1966_p7), %s166_s19, 4294966784  ;;  %p1109_p8 = scmp.ne.s32.totalorder %s1351_s13, 0 }
  0x4d   : > { %v1315_v0 = vmov (!%p1109_p8), 0.0  }
  0x4e   : > { %195 = sbr.rel (%p1109_p8) target bundleno = 85 (0x55), region = 40  ;;  %196 = vst [vmem:[#allocation2] sm:$0xff] (!%p1109_p8), %v1315_v0  ;;  %197 = vst [vmem:[#allocation2 + $0x8] sm:$0xff] (!%p1109_p8), %v1315_v0 }
  0x4f   : > { %198 = vst [vmem:[#allocation2 + $0x10] sm:$0xff] (!%p1109_p8), %v1315_v0  ;;  %199 = vst [vmem:[#allocation2 + $0x18] sm:$0xff] (!%p1109_p8), %v1315_v0 }
  0x50   : > { %200 = vst [vmem:[#allocation2 + $0x20] sm:$0xff] (!%p1109_p8), %v1315_v0 }
  0x55 PF: > { %v217_v1 = vlaneseq  ;;  %v205_v2 = vld [vmem:[%s169_s27] sm:$0xff]  ;;  %v206_v3 = vld [vmem:[%s169_s27 + $0x8] sm:$0xff]  ;;  %v207_v4 = vld [vmem:[%s169_s27 + $0x10] sm:$0xff]  ;;  %p1110_p11 = scmp.ne.s32.totalorder %s1351_s13, 1 }
  0x56   : > { %v208_v5 = vld [vmem:[%s169_s27 + $0x18] sm:$0xff]  ;;  %v209_v6 = vmul.f32 1.442695, %v205_v2  ;;  %v211_v7 = vmul.f32 1.442695, %v206_v3  ;;  %v1489_v10 = vld [vmem:[%s1474_s3] sm:$0xff] }
  0x57   : > { %v1486_v8 = vshrl.u32 %v217_v1, 7  ;;  %v213_v9 = vmul.f32 1.442695, %v207_v4  ;;  %v215_v11 = vmul.f32 1.442695, %v208_v5  ;;  %v223_v31 = vld [vmem:[#allocation2] sm:$0xff] }
  0x58   : > { %1171 = vpow2.f32 %v209_v6  ;;  %v224_v32 = vld [vmem:[#allocation2 + $0x8] sm:$0xff]  ;;  %v225_v33 = vld [vmem:[#allocation2 + $0x10] sm:$0xff]  ;;  %v226_v36 = vld [vmem:[#allocation2 + $0x18] sm:$0xff] }
  0x59   : > { %1173 = vpow2.f32 %v211_v7  ;;  %v1492_v12 = vadd.s32 8, %v1486_v8  ;;  %v1495_v13 = vadd.s32 16, %v1486_v8  ;;  %v1498_v14 = vsub.s32 0, %v1486_v8  ;;  %v227_v37 = vld [vmem:[#allocation2 + $0x20] sm:$0xff] }
  0x5a   : > { %v1501_v15 = vsub.s32 1, %v1486_v8  ;;  %v1504_v16 = vadd.s32 24, %v1486_v8  ;;  %v1507_v17 = vsub.s32 2, %v1486_v8  ;;  %v1510_v18 = vsub.s32 3, %v1486_v8 }
  0x5b   : > { %v1513_v19 = vsub.s32 4, %v1486_v8  ;;  %1175 = vpow2.f32 %v213_v9  ;;  %v1516_v20 = vadd.s32 32, %v1486_v8  ;;  %v231_v21 = vrot.slane %v1489_v10, %v1498_v14 }
  0x5c   : > { %v254_v22 = vrot.slane %v1489_v10, %v1501_v15  ;;  %1177 = vpow2.f32 %v215_v11  ;;  %v1524_v23 = vrot.slane %v1489_v10, %v1507_v17  ;;  %v1527_v24 = vsub.s32 5, %v1486_v8 }
  0x5d   : > { %v1531_v25 = vrot.slane %v1489_v10, %v1510_v18  ;;  %v1535_v26 = vrot.slane %v1489_v10, %v1513_v19  ;;  %v1538_v27 = vsub.s32 6, %v1486_v8  ;;  %v1541_v28 = vsub.s32 7, %v1486_v8 }
  0x5e   : > { %vm232_vm0 = vcmp.eq.s32.totalorder %v1486_v8, %v231_v21  ;;  %vm233_vm1 = vcmp.eq.s32.totalorder %v1492_v12, %v231_v21  ;;  %vm234_vm2 = vcmp.eq.s32.totalorder %v1495_v13, %v231_v21  ;;  %vm235_vm3 = vcmp.eq.s32.totalorder %v1504_v16, %v231_v21 }
  0x5f   : > { %vm236_vm4 = vcmp.eq.s32.totalorder %v1516_v20, %v231_v21  ;;  %vm255_vm5 = vcmp.eq.s32.totalorder %v1486_v8, %v254_v22  ;;  %vm256_vm6 = vcmp.eq.s32.totalorder %v1492_v12, %v254_v22  ;;  %vm257_vm7 = vcmp.eq.s32.totalorder %v1495_v13, %v254_v22 }
  0x60   : > { %vm258_vm8 = vcmp.eq.s32.totalorder %v1504_v16, %v254_v22  ;;  %vm259_vm9 = vcmp.eq.s32.totalorder %v1516_v20, %v254_v22  ;;  %vm278_vm10 = vcmp.eq.s32.totalorder %v1486_v8, %v1524_v23  ;;  %vm279_vm11 = vcmp.eq.s32.totalorder %v1492_v12, %v1524_v23 }
  0x61   : > { %vm302_vm13 = vcmp.eq.s32.totalorder %v1492_v12, %v1531_v25  ;;  %vm303_vm14 = vcmp.eq.s32.totalorder %v1495_v13, %v1531_v25  ;;  %vm304_vm15 = vcmp.eq.s32.totalorder %v1504_v16, %v1531_v25  ;;  %vm305_vm12 = vcmp.eq.s32.totalorder %v1516_v20, %v1531_v25 }
  0x62   : > { %v1557_v29 = vpop.eup %1171 }
  0x63   : > { %v1567_v30 = vpop.eup %1173  ;;  %v240_v34 = vrot.slane %v1557_v29, %v1498_v14  ;;  %v263_v35 = vrot.slane %v1557_v29, %v1501_v15  ;;  %v286_v38 = vrot.slane %v1557_v29, %v1507_v17  ;;  %v309_v39 = vrot.slane %v1557_v29, %v1510_v18 }
  0x65   : > { %v241_v40 = vsel %vm232_vm0, %v240_v34, 0.0  ;;  %v242_v41 = vsel %vm233_vm1, %v240_v34, 0.0  ;;  %v243_v42 = vsel %vm234_vm2, %v240_v34, 0.0  ;;  %v244_v43 = vsel %vm235_vm3, %v240_v34, 0.0  ;;  %v1593_v44 = vpop.eup %1175 }
  0x66   : > { %v245_v45 = vsel %vm236_vm4, %v240_v34, 0.0  ;;  %v246_v46 = vadd.f32 %v241_v40, %v223_v31  ;;  %v247_v47 = vadd.f32 %v242_v41, %v224_v32  ;;  %v248_v48 = vadd.f32 %v243_v42, %v225_v33  ;;  %v1605_v49 = vpop.eup %1177 }
  0x67   : > { %vm324_vm0 = vcmp.eq.s32.totalorder %v1486_v8, %v1535_v26  ;;  %vm325_vm1 = vcmp.eq.s32.totalorder %v1492_v12, %v1535_v26  ;;  %vm326_vm2 = vcmp.eq.s32.totalorder %v1495_v13, %v1535_v26  ;;  %vm327_vm3 = vcmp.eq.s32.totalorder %v1504_v16, %v1535_v26 }
  0x68   : > { %v249_v50 = vadd.f32 %v244_v43, %v226_v36  ;;  %v250_v51 = vadd.f32 %v245_v45, %v227_v37  ;;  %v264_v52 = vsel %vm255_vm5, %v263_v35, 0.0  ;;  %v265_v53 = vsel %vm256_vm6, %v263_v35, 0.0 }
  0x69   : > { %v266_v54 = vsel %vm257_vm7, %v263_v35, 0.0  ;;  %v267_v55 = vsel %vm258_vm8, %v263_v35, 0.0  ;;  %v268_v56 = vsel %vm259_vm9, %v263_v35, 0.0  ;;  %v269_v57 = vadd.f32 %v264_v52, %v246_v46 }
  0x6a   : > { %v270_v58 = vadd.f32 %v265_v53, %v247_v47  ;;  %v271_v59 = vadd.f32 %v266_v54, %v248_v48  ;;  %v272_v60 = vadd.f32 %v267_v55, %v249_v50  ;;  %v273_v61 = vadd.f32 %v268_v56, %v250_v51 }
  0x6b   : > { %v287_v62 = vsel %vm278_vm10, %v286_v38, 0.0  ;;  %v288_v63 = vsel %vm279_vm11, %v286_v38, 0.0  ;;  %vm1967_vm4 = vcmp.eq.s32.totalorder %v1495_v13, %v1524_v23  ;;  %vm1968_vm5 = vcmp.eq.s32.totalorder %v1504_v16, %v1524_v23 }
  0x6c   : > { %v289_v0 = vsel %vm1967_vm4, %v286_v38, 0.0  ;;  %v290_v2 = vsel %vm1968_vm5, %v286_v38, 0.0  ;;  %vm1969_vm6 = vcmp.eq.s32.totalorder %v1516_v20, %v1524_v23  ;;  %v292_v4 = vadd.f32 %v287_v62, %v269_v57 }
  0x6d   : > { %v291_v3 = vsel %vm1969_vm6, %v286_v38, 0.0  ;;  %v293_v5 = vadd.f32 %v288_v63, %v270_v58  ;;  %v294_v6 = vadd.f32 %v289_v0, %v271_v59  ;;  %v295_v7 = vadd.f32 %v290_v2, %v272_v60 }
  0x6e   : > { %v296_v9 = vadd.f32 %v291_v3, %v273_v61  ;;  %vm1970_vm7 = vcmp.eq.s32.totalorder %v1486_v8, %v1531_v25  ;;  %v311_v21 = vsel %vm302_vm13, %v309_v39, 0.0  ;;  %v312_v22 = vsel %vm303_vm14, %v309_v39, 0.0 }
  0x6f   : > { %v310_v11 = vsel %vm1970_vm7, %v309_v39, 0.0  ;;  %v313_v23 = vsel %vm304_vm15, %v309_v39, 0.0  ;;  %v314_v31 = vsel %vm305_vm12, %v309_v39, 0.0  ;;  %v316_v33 = vadd.f32 %v311_v21, %v293_v5 }
  0x70   : > { %v315_v32 = vadd.f32 %v310_v11, %v292_v4  ;;  %v317_v34 = vadd.f32 %v312_v22, %v294_v6  ;;  %v318_v35 = vadd.f32 %v313_v23, %v295_v7  ;;  %v319_v36 = vadd.f32 %v314_v31, %v296_v9  ;;  %v1686_v11 = vld [vmem:[%s1474_s3 + $0x8] sm:$0xff] }
  0x71   : > { %vm328_vm8 = vcmp.eq.s32.totalorder %v1516_v20, %v1535_v26  ;;  %v332_v37 = vrot.slane %v1557_v29, %v1513_v19  ;;  %v346_v38 = vrot.slane %v1489_v10, %v1527_v24  ;;  %v355_v40 = vrot.slane %v1557_v29, %v1527_v24 }
  0x72   : > { %v369_v25 = vrot.slane %v1489_v10, %v1538_v27  ;;  %v378_v39 = vrot.slane %v1557_v29, %v1538_v27  ;;  %v392_v41 = vrot.slane %v1489_v10, %v1541_v28  ;;  %v401_v42 = vrot.slane %v1557_v29, %v1541_v28 }
  0x73   : > { %v333_v43 = vsel %vm324_vm0, %v332_v37, 0.0  ;;  %v334_v45 = vsel %vm325_vm1, %v332_v37, 0.0  ;;  %v335_v46 = vsel %vm326_vm2, %v332_v37, 0.0  ;;  %v336_v47 = vsel %vm327_vm3, %v332_v37, 0.0 }
  0x74   : > { %v337_v10 = vsel %vm328_vm8, %v332_v37, 0.0  ;;  %v338_v48 = vadd.f32 %v333_v43, %v315_v32  ;;  %v339_v50 = vadd.f32 %v334_v45, %v316_v33  ;;  %v340_v29 = vadd.f32 %v335_v46, %v317_v34 }
  0x75   : > { %v341_v51 = vadd.f32 %v336_v47, %v318_v35  ;;  %v342_v52 = vadd.f32 %v337_v10, %v319_v36  ;;  %vm347_vm9 = vcmp.eq.s32.totalorder %v1486_v8, %v346_v38  ;;  %vm348_vm10 = vcmp.eq.s32.totalorder %v1492_v12, %v346_v38 }
  0x76   : > { %vm349_vm11 = vcmp.eq.s32.totalorder %v1495_v13, %v346_v38  ;;  %vm350_vm12 = vcmp.eq.s32.totalorder %v1504_v16, %v346_v38  ;;  %vm351_vm13 = vcmp.eq.s32.totalorder %v1516_v20, %v346_v38  ;;  %v356_v53 = vsel %vm347_vm9, %v355_v40, 0.0 }
  0x77   : > { %v357_v54 = vsel %vm348_vm10, %v355_v40, 0.0  ;;  %v358_v26 = vsel %vm349_vm11, %v355_v40, 0.0  ;;  %v359_v55 = vsel %vm350_vm12, %v355_v40, 0.0  ;;  %v360_v56 = vsel %vm351_vm13, %v355_v40, 0.0 }
  0x78   : > { %v361_v57 = vadd.f32 %v356_v53, %v338_v48  ;;  %v362_v58 = vadd.f32 %v357_v54, %v339_v50  ;;  %v363_v59 = vadd.f32 %v358_v26, %v340_v29  ;;  %v364_v60 = vadd.f32 %v359_v55, %v341_v51 }
  0x79   : > { %v365_v61 = vadd.f32 %v360_v56, %v342_v52  ;;  %vm370_vm14 = vcmp.eq.s32.totalorder %v1486_v8, %v369_v25  ;;  %vm371_vm15 = vcmp.eq.s32.totalorder %v1492_v12, %v369_v25  ;;  %vm372_vm0 = vcmp.eq.s32.totalorder %v1495_v13, %v369_v25 }
  0x7a   : > { %vm373_vm1 = vcmp.eq.s32.totalorder %v1504_v16, %v369_v25  ;;  %vm374_vm2 = vcmp.eq.s32.totalorder %v1516_v20, %v369_v25  ;;  %v379_v62 = vsel %vm370_vm14, %v378_v39, 0.0  ;;  %v380_v63 = vsel %vm371_vm15, %v378_v39, 0.0 }
  0x7b   : > { %v381_v0 = vsel %vm372_vm0, %v378_v39, 0.0  ;;  %v382_v2 = vsel %vm373_vm1, %v378_v39, 0.0  ;;  %v383_v3 = vsel %vm374_vm2, %v378_v39, 0.0  ;;  %v384_v4 = vadd.f32 %v379_v62, %v361_v57 }
  0x7c   : > { %v385_v5 = vadd.f32 %v380_v63, %v362_v58  ;;  %v386_v6 = vadd.f32 %v381_v0, %v363_v59  ;;  %v387_v7 = vadd.f32 %v382_v2, %v364_v60  ;;  %v388_v9 = vadd.f32 %v383_v3, %v365_v61 }
  0x7d   : > { %vm393_vm3 = vcmp.eq.s32.totalorder %v1486_v8, %v392_v41  ;;  %vm394_vm4 = vcmp.eq.s32.totalorder %v1492_v12, %v392_v41  ;;  %vm395_vm5 = vcmp.eq.s32.totalorder %v1495_v13, %v392_v41  ;;  %vm396_vm6 = vcmp.eq.s32.totalorder %v1504_v16, %v392_v41 }
  0x7e   : > { %vm397_vm7 = vcmp.eq.s32.totalorder %v1516_v20, %v392_v41  ;;  %v402_v21 = vsel %vm393_vm3, %v401_v42, 0.0  ;;  %v403_v22 = vsel %vm394_vm4, %v401_v42, 0.0  ;;  %v404_v23 = vsel %vm395_vm5, %v401_v42, 0.0 }
  0x7f   : > { %v405_v31 = vsel %vm396_vm6, %v401_v42, 0.0  ;;  %v406_v32 = vsel %vm397_vm7, %v401_v42, 0.0  ;;  %v407_v33 = vadd.f32 %v402_v21, %v384_v4  ;;  %v408_v34 = vadd.f32 %v403_v22, %v385_v5 }
  0x80   : > { %v409_v35 = vadd.f32 %v404_v23, %v386_v6  ;;  %v410_v36 = vadd.f32 %v405_v31, %v387_v7  ;;  %v411_v37 = vadd.f32 %v406_v32, %v388_v9  ;;  %v415_v38 = vrot.slane %v1686_v11, %v1498_v14 }
  0x81   : > { %v424_v40 = vrot.slane %v1567_v30, %v1498_v14  ;;  %v438_v25 = vrot.slane %v1686_v11, %v1501_v15  ;;  %v447_v39 = vrot.slane %v1567_v30, %v1501_v15  ;;  %v461_v41 = vrot.slane %v1686_v11, %v1507_v17 }
  0x82   : > { %vm416_vm8 = vcmp.eq.s32.totalorder %v1486_v8, %v415_v38  ;;  %vm417_vm9 = vcmp.eq.s32.totalorder %v1492_v12, %v415_v38  ;;  %vm418_vm10 = vcmp.eq.s32.totalorder %v1495_v13, %v415_v38  ;;  %vm419_vm11 = vcmp.eq.s32.totalorder %v1504_v16, %v415_v38 }
  0x83   : > { %vm420_vm12 = vcmp.eq.s32.totalorder %v1516_v20, %v415_v38  ;;  %v425_v42 = vsel %vm416_vm8, %v424_v40, 0.0  ;;  %v426_v43 = vsel %vm417_vm9, %v424_v40, 0.0  ;;  %v427_v45 = vsel %vm418_vm10, %v424_v40, 0.0 }
  0x84   : > { %v428_v46 = vsel %vm419_vm11, %v424_v40, 0.0  ;;  %v429_v47 = vsel %vm420_vm12, %v424_v40, 0.0  ;;  %v430_v10 = vadd.f32 %v425_v42, %v407_v33  ;;  %v431_v48 = vadd.f32 %v426_v43, %v408_v34  ;;  %v1739_v43 = vld [vmem:[%s1474_s3 + $0x10] sm:$0xff] }
  0x85   : > { %v432_v50 = vadd.f32 %v427_v45, %v409_v35  ;;  %v433_v29 = vadd.f32 %v428_v46, %v410_v36  ;;  %v434_v51 = vadd.f32 %v429_v47, %v411_v37  ;;  %vm439_vm13 = vcmp.eq.s32.totalorder %v1486_v8, %v438_v25 }
  0x86   : > { %vm440_vm14 = vcmp.eq.s32.totalorder %v1492_v12, %v438_v25  ;;  %vm441_vm15 = vcmp.eq.s32.totalorder %v1495_v13, %v438_v25  ;;  %vm442_vm0 = vcmp.eq.s32.totalorder %v1504_v16, %v438_v25  ;;  %vm443_vm1 = vcmp.eq.s32.totalorder %v1516_v20, %v438_v25 }
  0x87   : > { %v448_v52 = vsel %vm439_vm13, %v447_v39, 0.0  ;;  %v449_v53 = vsel %vm440_vm14, %v447_v39, 0.0  ;;  %v450_v54 = vsel %vm441_vm15, %v447_v39, 0.0  ;;  %v451_v26 = vsel %vm442_vm0, %v447_v39, 0.0 }
  0x88   : > { %v452_v55 = vsel %vm443_vm1, %v447_v39, 0.0  ;;  %v453_v56 = vadd.f32 %v448_v52, %v430_v10  ;;  %v454_v57 = vadd.f32 %v449_v53, %v431_v48  ;;  %v455_v58 = vadd.f32 %v450_v54, %v432_v50 }
  0x89   : > { %v456_v59 = vadd.f32 %v451_v26, %v433_v29  ;;  %v457_v60 = vadd.f32 %v452_v55, %v434_v51  ;;  %vm462_vm2 = vcmp.eq.s32.totalorder %v1486_v8, %v461_v41  ;;  %vm463_vm3 = vcmp.eq.s32.totalorder %v1492_v12, %v461_v41 }
  0x8a   : > { %vm464_vm4 = vcmp.eq.s32.totalorder %v1495_v13, %v461_v41  ;;  %vm465_vm5 = vcmp.eq.s32.totalorder %v1504_v16, %v461_v41  ;;  %vm466_vm6 = vcmp.eq.s32.totalorder %v1516_v20, %v461_v41  ;;  %v470_v61 = vrot.slane %v1567_v30, %v1507_v17 }
  0x8b   : > { %v484_v62 = vrot.slane %v1686_v11, %v1510_v18  ;;  %v493_v63 = vrot.slane %v1567_v30, %v1510_v18  ;;  %v507_v0 = vrot.slane %v1686_v11, %v1513_v19  ;;  %v516_v2 = vrot.slane %v1567_v30, %v1513_v19 }
  0x8c   : > { %v471_v3 = vsel %vm462_vm2, %v470_v61, 0.0  ;;  %v472_v4 = vsel %vm463_vm3, %v470_v61, 0.0  ;;  %v473_v5 = vsel %vm464_vm4, %v470_v61, 0.0  ;;  %v474_v6 = vsel %vm465_vm5, %v470_v61, 0.0 }
  0x8d   : > { %v475_v7 = vsel %vm466_vm6, %v470_v61, 0.0  ;;  %v476_v9 = vadd.f32 %v471_v3, %v453_v56  ;;  %v477_v21 = vadd.f32 %v472_v4, %v454_v57  ;;  %v478_v22 = vadd.f32 %v473_v5, %v455_v58 }
  0x8e   : > { %v479_v23 = vadd.f32 %v474_v6, %v456_v59  ;;  %v480_v31 = vadd.f32 %v475_v7, %v457_v60  ;;  %vm485_vm7 = vcmp.eq.s32.totalorder %v1486_v8, %v484_v62  ;;  %vm486_vm8 = vcmp.eq.s32.totalorder %v1492_v12, %v484_v62 }
  0x8f   : > { %vm487_vm9 = vcmp.eq.s32.totalorder %v1495_v13, %v484_v62  ;;  %vm488_vm10 = vcmp.eq.s32.totalorder %v1504_v16, %v484_v62  ;;  %vm489_vm11 = vcmp.eq.s32.totalorder %v1516_v20, %v484_v62  ;;  %v494_v32 = vsel %vm485_vm7, %v493_v63, 0.0 }
  0x90   : > { %v495_v33 = vsel %vm486_vm8, %v493_v63, 0.0  ;;  %v496_v34 = vsel %vm487_vm9, %v493_v63, 0.0  ;;  %v497_v35 = vsel %vm488_vm10, %v493_v63, 0.0  ;;  %v498_v36 = vsel %vm489_vm11, %v493_v63, 0.0 }
  0x91   : > { %v499_v37 = vadd.f32 %v494_v32, %v476_v9  ;;  %v500_v38 = vadd.f32 %v495_v33, %v477_v21  ;;  %v501_v40 = vadd.f32 %v496_v34, %v478_v22  ;;  %v502_v25 = vadd.f32 %v497_v35, %v479_v23 }
  0x92   : > { %v503_v39 = vadd.f32 %v498_v36, %v480_v31  ;;  %vm508_vm12 = vcmp.eq.s32.totalorder %v1486_v8, %v507_v0  ;;  %vm509_vm13 = vcmp.eq.s32.totalorder %v1492_v12, %v507_v0  ;;  %vm510_vm14 = vcmp.eq.s32.totalorder %v1495_v13, %v507_v0 }
  0x93   : > { %vm511_vm15 = vcmp.eq.s32.totalorder %v1504_v16, %v507_v0  ;;  %vm512_vm0 = vcmp.eq.s32.totalorder %v1516_v20, %v507_v0  ;;  %v517_v41 = vsel %vm508_vm12, %v516_v2, 0.0  ;;  %v518_v42 = vsel %vm509_vm13, %v516_v2, 0.0 }
  0x94   : > { %v519_v45 = vsel %vm510_vm14, %v516_v2, 0.0  ;;  %v520_v46 = vsel %vm511_vm15, %v516_v2, 0.0  ;;  %v521_v47 = vsel %vm512_vm0, %v516_v2, 0.0  ;;  %v522_v10 = vadd.f32 %v517_v41, %v499_v37 }
  0x95   : > { %v523_v48 = vadd.f32 %v518_v42, %v500_v38  ;;  %v524_v50 = vadd.f32 %v519_v45, %v501_v40  ;;  %v525_v29 = vadd.f32 %v520_v46, %v502_v25  ;;  %v526_v51 = vadd.f32 %v521_v47, %v503_v39 }
  0x96   : > { %v530_v52 = vrot.slane %v1686_v11, %v1527_v24  ;;  %v539_v53 = vrot.slane %v1567_v30, %v1527_v24  ;;  %v553_v54 = vrot.slane %v1686_v11, %v1538_v27  ;;  %v562_v26 = vrot.slane %v1567_v30, %v1538_v27 }
  0x97   : > { %v576_v55 = vrot.slane %v1686_v11, %v1541_v28  ;;  %v585_v56 = vrot.slane %v1567_v30, %v1541_v28  ;;  %v599_v57 = vrot.slane %v1739_v43, %v1498_v14  ;;  %v608_v58 = vrot.slane %v1593_v44, %v1498_v14 }
  0x98   : > { %vm531_vm1 = vcmp.eq.s32.totalorder %v1486_v8, %v530_v52  ;;  %vm532_vm2 = vcmp.eq.s32.totalorder %v1492_v12, %v530_v52  ;;  %vm533_vm3 = vcmp.eq.s32.totalorder %v1495_v13, %v530_v52  ;;  %vm534_vm4 = vcmp.eq.s32.totalorder %v1504_v16, %v530_v52 }
  0x99   : > { %vm535_vm5 = vcmp.eq.s32.totalorder %v1516_v20, %v530_v52  ;;  %v540_v11 = vsel %vm531_vm1, %v539_v53, 0.0  ;;  %v541_v59 = vsel %vm532_vm2, %v539_v53, 0.0  ;;  %v542_v60 = vsel %vm533_vm3, %v539_v53, 0.0 }
  0x9a   : > { %v543_v30 = vsel %vm534_vm4, %v539_v53, 0.0  ;;  %v544_v61 = vsel %vm535_vm5, %v539_v53, 0.0  ;;  %v545_v62 = vadd.f32 %v540_v11, %v522_v10  ;;  %v546_v63 = vadd.f32 %v541_v59, %v523_v48 }
  0x9b   : > { %v547_v0 = vadd.f32 %v542_v60, %v524_v50  ;;  %v548_v2 = vadd.f32 %v543_v30, %v525_v29  ;;  %v549_v3 = vadd.f32 %v544_v61, %v526_v51  ;;  %vm554_vm6 = vcmp.eq.s32.totalorder %v1486_v8, %v553_v54 }
  0x9c   : > { %vm555_vm7 = vcmp.eq.s32.totalorder %v1492_v12, %v553_v54  ;;  %vm556_vm8 = vcmp.eq.s32.totalorder %v1495_v13, %v553_v54  ;;  %vm557_vm9 = vcmp.eq.s32.totalorder %v1504_v16, %v553_v54  ;;  %vm558_vm10 = vcmp.eq.s32.totalorder %v1516_v20, %v553_v54 }
  0x9d   : > { %v563_v4 = vsel %vm554_vm6, %v562_v26, 0.0  ;;  %v564_v5 = vsel %vm555_vm7, %v562_v26, 0.0  ;;  %v565_v6 = vsel %vm556_vm8, %v562_v26, 0.0  ;;  %v566_v7 = vsel %vm557_vm9, %v562_v26, 0.0 }
  0x9e   : > { %v567_v9 = vsel %vm558_vm10, %v562_v26, 0.0  ;;  %v568_v21 = vadd.f32 %v563_v4, %v545_v62  ;;  %v569_v22 = vadd.f32 %v564_v5, %v546_v63  ;;  %v570_v23 = vadd.f32 %v565_v6, %v547_v0 }
  0x9f   : > { %v571_v31 = vadd.f32 %v566_v7, %v548_v2  ;;  %v572_v32 = vadd.f32 %v567_v9, %v549_v3  ;;  %vm577_vm11 = vcmp.eq.s32.totalorder %v1486_v8, %v576_v55  ;;  %vm578_vm12 = vcmp.eq.s32.totalorder %v1492_v12, %v576_v55 }
  0xa0   : > { %vm579_vm13 = vcmp.eq.s32.totalorder %v1495_v13, %v576_v55  ;;  %vm580_vm14 = vcmp.eq.s32.totalorder %v1504_v16, %v576_v55  ;;  %vm581_vm15 = vcmp.eq.s32.totalorder %v1516_v20, %v576_v55  ;;  %v586_v33 = vsel %vm577_vm11, %v585_v56, 0.0 }
  0xa1   : > { %v587_v34 = vsel %vm578_vm12, %v585_v56, 0.0  ;;  %v588_v35 = vsel %vm579_vm13, %v585_v56, 0.0  ;;  %v589_v36 = vsel %vm580_vm14, %v585_v56, 0.0  ;;  %v590_v37 = vsel %vm581_vm15, %v585_v56, 0.0 }
  0xa2   : > { %v591_v38 = vadd.f32 %v586_v33, %v568_v21  ;;  %v592_v40 = vadd.f32 %v587_v34, %v569_v22  ;;  %v593_v25 = vadd.f32 %v588_v35, %v570_v23  ;;  %v594_v39 = vadd.f32 %v589_v36, %v571_v31 }
  0xa3   : > { %v595_v41 = vadd.f32 %v590_v37, %v572_v32  ;;  %vm600_vm0 = vcmp.eq.s32.totalorder %v1486_v8, %v599_v57  ;;  %vm601_vm1 = vcmp.eq.s32.totalorder %v1492_v12, %v599_v57  ;;  %vm602_vm2 = vcmp.eq.s32.totalorder %v1495_v13, %v599_v57 }
  0xa4   : > { %vm603_vm3 = vcmp.eq.s32.totalorder %v1504_v16, %v599_v57  ;;  %vm604_vm4 = vcmp.eq.s32.totalorder %v1516_v20, %v599_v57  ;;  %v609_v42 = vsel %vm600_vm0, %v608_v58, 0.0  ;;  %v610_v45 = vsel %vm601_vm1, %v608_v58, 0.0 }
  0xa5   : > { %v611_v46 = vsel %vm602_vm2, %v608_v58, 0.0  ;;  %v612_v47 = vsel %vm603_vm3, %v608_v58, 0.0  ;;  %v613_v10 = vsel %vm604_vm4, %v608_v58, 0.0  ;;  %v614_v48 = vadd.f32 %v609_v42, %v591_v38 }
  0xa6   : > { %v615_v50 = vadd.f32 %v610_v45, %v592_v40  ;;  %v616_v29 = vadd.f32 %v611_v46, %v593_v25  ;;  %v617_v51 = vadd.f32 %v612_v47, %v594_v39  ;;  %v618_v52 = vadd.f32 %v613_v10, %v595_v41  ;;  %v1814_v47 = vld [vmem:[%s1474_s3 + $0x18] sm:$0xff] }
  0xa7   : > { %v622_v53 = vrot.slane %v1739_v43, %v1501_v15  ;;  %v631_v54 = vrot.slane %v1593_v44, %v1501_v15  ;;  %v645_v26 = vrot.slane %v1739_v43, %v1507_v17  ;;  %v654_v55 = vrot.slane %v1593_v44, %v1507_v17 }
  0xa8   : > { %v668_v56 = vrot.slane %v1739_v43, %v1510_v18  ;;  %v677_v57 = vrot.slane %v1593_v44, %v1510_v18  ;;  %v691_v58 = vrot.slane %v1739_v43, %v1513_v19  ;;  %v700_v11 = vrot.slane %v1593_v44, %v1513_v19 }
  0xa9   : > { %vm623_vm5 = vcmp.eq.s32.totalorder %v1486_v8, %v622_v53  ;;  %vm624_vm6 = vcmp.eq.s32.totalorder %v1492_v12, %v622_v53  ;;  %vm625_vm7 = vcmp.eq.s32.totalorder %v1495_v13, %v622_v53  ;;  %vm626_vm8 = vcmp.eq.s32.totalorder %v1504_v16, %v622_v53 }
  0xaa   : > { %vm627_vm9 = vcmp.eq.s32.totalorder %v1516_v20, %v622_v53  ;;  %v632_v59 = vsel %vm623_vm5, %v631_v54, 0.0  ;;  %v633_v60 = vsel %vm624_vm6, %v631_v54, 0.0  ;;  %v634_v30 = vsel %vm625_vm7, %v631_v54, 0.0 }
  0xab   : > { %v635_v61 = vsel %vm626_vm8, %v631_v54, 0.0  ;;  %v636_v62 = vsel %vm627_vm9, %v631_v54, 0.0  ;;  %v637_v63 = vadd.f32 %v632_v59, %v614_v48  ;;  %v638_v0 = vadd.f32 %v633_v60, %v615_v50 }
  0xac   : > { %v639_v2 = vadd.f32 %v634_v30, %v616_v29  ;;  %v640_v3 = vadd.f32 %v635_v61, %v617_v51  ;;  %v641_v4 = vadd.f32 %v636_v62, %v618_v52  ;;  %vm646_vm10 = vcmp.eq.s32.totalorder %v1486_v8, %v645_v26 }
  0xad   : > { %vm647_vm11 = vcmp.eq.s32.totalorder %v1492_v12, %v645_v26  ;;  %vm648_vm12 = vcmp.eq.s32.totalorder %v1495_v13, %v645_v26  ;;  %vm649_vm13 = vcmp.eq.s32.totalorder %v1504_v16, %v645_v26  ;;  %vm650_vm14 = vcmp.eq.s32.totalorder %v1516_v20, %v645_v26 }
  0xae   : > { %v655_v5 = vsel %vm646_vm10, %v654_v55, 0.0  ;;  %v656_v6 = vsel %vm647_vm11, %v654_v55, 0.0  ;;  %v657_v7 = vsel %vm648_vm12, %v654_v55, 0.0  ;;  %v658_v9 = vsel %vm649_vm13, %v654_v55, 0.0 }
  0xaf   : > { %v659_v21 = vsel %vm650_vm14, %v654_v55, 0.0  ;;  %v660_v22 = vadd.f32 %v655_v5, %v637_v63  ;;  %v661_v23 = vadd.f32 %v656_v6, %v638_v0  ;;  %v662_v31 = vadd.f32 %v657_v7, %v639_v2 }
  0xb0   : > { %v663_v32 = vadd.f32 %v658_v9, %v640_v3  ;;  %v664_v33 = vadd.f32 %v659_v21, %v641_v4  ;;  %vm669_vm15 = vcmp.eq.s32.totalorder %v1486_v8, %v668_v56  ;;  %vm670_vm0 = vcmp.eq.s32.totalorder %v1492_v12, %v668_v56 }
  0xb1   : > { %vm671_vm1 = vcmp.eq.s32.totalorder %v1495_v13, %v668_v56  ;;  %vm672_vm2 = vcmp.eq.s32.totalorder %v1504_v16, %v668_v56  ;;  %vm673_vm3 = vcmp.eq.s32.totalorder %v1516_v20, %v668_v56  ;;  %v678_v34 = vsel %vm669_vm15, %v677_v57, 0.0 }
  0xb2   : > { %v679_v35 = vsel %vm670_vm0, %v677_v57, 0.0  ;;  %v680_v36 = vsel %vm671_vm1, %v677_v57, 0.0  ;;  %v681_v37 = vsel %vm672_vm2, %v677_v57, 0.0  ;;  %v682_v38 = vsel %vm673_vm3, %v677_v57, 0.0 }
  0xb3   : > { %v683_v40 = vadd.f32 %v678_v34, %v660_v22  ;;  %v684_v25 = vadd.f32 %v679_v35, %v661_v23  ;;  %v685_v39 = vadd.f32 %v680_v36, %v662_v31  ;;  %v686_v41 = vadd.f32 %v681_v37, %v663_v32 }
  0xb4   : > { %v687_v42 = vadd.f32 %v682_v38, %v664_v33  ;;  %vm692_vm4 = vcmp.eq.s32.totalorder %v1486_v8, %v691_v58  ;;  %vm693_vm5 = vcmp.eq.s32.totalorder %v1492_v12, %v691_v58  ;;  %vm694_vm6 = vcmp.eq.s32.totalorder %v1495_v13, %v691_v58 }
  0xb5   : > { %vm695_vm7 = vcmp.eq.s32.totalorder %v1504_v16, %v691_v58  ;;  %vm696_vm8 = vcmp.eq.s32.totalorder %v1516_v20, %v691_v58  ;;  %v701_v45 = vsel %vm692_vm4, %v700_v11, 0.0  ;;  %v702_v46 = vsel %vm693_vm5, %v700_v11, 0.0 }
  0xb6   : > { %v703_v10 = vsel %vm694_vm6, %v700_v11, 0.0  ;;  %v704_v48 = vsel %vm695_vm7, %v700_v11, 0.0  ;;  %v705_v50 = vsel %vm696_vm8, %v700_v11, 0.0  ;;  %v706_v29 = vadd.f32 %v701_v45, %v683_v40 }
  0xb7   : > { %v707_v51 = vadd.f32 %v702_v46, %v684_v25  ;;  %v708_v52 = vadd.f32 %v703_v10, %v685_v39  ;;  %v709_v53 = vadd.f32 %v704_v48, %v686_v41  ;;  %v710_v54 = vadd.f32 %v705_v50, %v687_v42 }
  0xb8   : > { %v714_v26 = vrot.slane %v1739_v43, %v1527_v24  ;;  %v723_v55 = vrot.slane %v1593_v44, %v1527_v24  ;;  %v737_v56 = vrot.slane %v1739_v43, %v1538_v27  ;;  %v746_v57 = vrot.slane %v1593_v44, %v1538_v27 }
  0xb9   : > { %v760_v58 = vrot.slane %v1739_v43, %v1541_v28  ;;  %v769_v11 = vrot.slane %v1593_v44, %v1541_v28  ;;  %v783_v59 = vrot.slane %v1814_v47, %v1498_v14  ;;  %v792_v60 = vrot.slane %v1605_v49, %v1498_v14 }
  0xba   : > { %vm715_vm9 = vcmp.eq.s32.totalorder %v1486_v8, %v714_v26  ;;  %vm716_vm10 = vcmp.eq.s32.totalorder %v1492_v12, %v714_v26  ;;  %vm717_vm11 = vcmp.eq.s32.totalorder %v1495_v13, %v714_v26  ;;  %vm718_vm12 = vcmp.eq.s32.totalorder %v1504_v16, %v714_v26 }
  0xbb   : > { %vm719_vm13 = vcmp.eq.s32.totalorder %v1516_v20, %v714_v26  ;;  %v724_v43 = vsel %vm715_vm9, %v723_v55, 0.0  ;;  %v725_v30 = vsel %vm716_vm10, %v723_v55, 0.0  ;;  %v726_v61 = vsel %vm717_vm11, %v723_v55, 0.0 }
  0xbc   : > { %v727_v44 = vsel %vm718_vm12, %v723_v55, 0.0  ;;  %v728_v62 = vsel %vm719_vm13, %v723_v55, 0.0  ;;  %v729_v63 = vadd.f32 %v724_v43, %v706_v29  ;;  %v730_v0 = vadd.f32 %v725_v30, %v707_v51 }
  0xbd   : > { %v731_v2 = vadd.f32 %v726_v61, %v708_v52  ;;  %v732_v3 = vadd.f32 %v727_v44, %v709_v53  ;;  %v733_v14 = vadd.f32 %v728_v62, %v710_v54  ;;  %vm738_vm14 = vcmp.eq.s32.totalorder %v1486_v8, %v737_v56 }
  0xbe   : > { %vm739_vm15 = vcmp.eq.s32.totalorder %v1492_v12, %v737_v56  ;;  %vm740_vm0 = vcmp.eq.s32.totalorder %v1495_v13, %v737_v56  ;;  %vm741_vm1 = vcmp.eq.s32.totalorder %v1504_v16, %v737_v56  ;;  %vm742_vm2 = vcmp.eq.s32.totalorder %v1516_v20, %v737_v56 }
  0xbf   : > { %v747_v4 = vsel %vm738_vm14, %v746_v57, 0.0  ;;  %v748_v5 = vsel %vm739_vm15, %v746_v57, 0.0  ;;  %v749_v6 = vsel %vm740_vm0, %v746_v57, 0.0  ;;  %v750_v7 = vsel %vm741_vm1, %v746_v57, 0.0 }
  0xc0   : > { %v751_v9 = vsel %vm742_vm2, %v746_v57, 0.0  ;;  %v752_v21 = vadd.f32 %v747_v4, %v729_v63  ;;  %v753_v22 = vadd.f32 %v748_v5, %v730_v0  ;;  %v754_v23 = vadd.f32 %v749_v6, %v731_v2 }
  0xc1   : > { %v755_v31 = vadd.f32 %v750_v7, %v732_v3  ;;  %v756_v32 = vadd.f32 %v751_v9, %v733_v14  ;;  %vm761_vm3 = vcmp.eq.s32.totalorder %v1486_v8, %v760_v58  ;;  %vm762_vm4 = vcmp.eq.s32.totalorder %v1492_v12, %v760_v58 }
  0xc2   : > { %vm763_vm5 = vcmp.eq.s32.totalorder %v1495_v13, %v760_v58  ;;  %vm764_vm6 = vcmp.eq.s32.totalorder %v1504_v16, %v760_v58  ;;  %vm765_vm7 = vcmp.eq.s32.totalorder %v1516_v20, %v760_v58  ;;  %v770_v33 = vsel %vm761_vm3, %v769_v11, 0.0 }
  0xc3   : > { %v771_v34 = vsel %vm762_vm4, %v769_v11, 0.0  ;;  %v772_v35 = vsel %vm763_vm5, %v769_v11, 0.0  ;;  %v773_v36 = vsel %vm764_vm6, %v769_v11, 0.0  ;;  %v774_v37 = vsel %vm765_vm7, %v769_v11, 0.0 }
  0xc4   : > { %v775_v38 = vadd.f32 %v770_v33, %v752_v21  ;;  %v776_v40 = vadd.f32 %v771_v34, %v753_v22  ;;  %v777_v25 = vadd.f32 %v772_v35, %v754_v23  ;;  %v778_v39 = vadd.f32 %v773_v36, %v755_v31 }
  0xc5   : > { %v779_v41 = vadd.f32 %v774_v37, %v756_v32  ;;  %vm784_vm8 = vcmp.eq.s32.totalorder %v1486_v8, %v783_v59  ;;  %vm785_vm9 = vcmp.eq.s32.totalorder %v1492_v12, %v783_v59  ;;  %vm786_vm10 = vcmp.eq.s32.totalorder %v1495_v13, %v783_v59 }
  0xc6   : > { %vm787_vm11 = vcmp.eq.s32.totalorder %v1504_v16, %v783_v59  ;;  %vm788_vm12 = vcmp.eq.s32.totalorder %v1516_v20, %v783_v59  ;;  %v793_v42 = vsel %vm784_vm8, %v792_v60, 0.0  ;;  %v794_v45 = vsel %vm785_vm9, %v792_v60, 0.0 }
  0xc7   : > { %v795_v46 = vsel %vm786_vm10, %v792_v60, 0.0  ;;  %v796_v10 = vsel %vm787_vm11, %v792_v60, 0.0  ;;  %v797_v48 = vsel %vm788_vm12, %v792_v60, 0.0  ;;  %v798_v50 = vadd.f32 %v793_v42, %v775_v38 }
  0xc8   : > { %v799_v29 = vadd.f32 %v794_v45, %v776_v40  ;;  %v800_v51 = vadd.f32 %v795_v46, %v777_v25  ;;  %v801_v52 = vadd.f32 %v796_v10, %v778_v39  ;;  %v802_v53 = vadd.f32 %v797_v48, %v779_v41 }
  0xc9   : > { %v806_v54 = vrot.slane %v1814_v47, %v1501_v15  ;;  %v815_v26 = vrot.slane %v1605_v49, %v1501_v15  ;;  %v829_v55 = vrot.slane %v1814_v47, %v1507_v17  ;;  %v838_v56 = vrot.slane %v1605_v49, %v1507_v17 }
  0xca   : > { %v852_v57 = vrot.slane %v1814_v47, %v1510_v18  ;;  %v861_v58 = vrot.slane %v1605_v49, %v1510_v18  ;;  %v875_v11 = vrot.slane %v1814_v47, %v1513_v19  ;;  %v884_v59 = vrot.slane %v1605_v49, %v1513_v19 }
  0xcb   : > { %vm807_vm13 = vcmp.eq.s32.totalorder %v1486_v8, %v806_v54  ;;  %vm808_vm14 = vcmp.eq.s32.totalorder %v1492_v12, %v806_v54  ;;  %vm809_vm15 = vcmp.eq.s32.totalorder %v1495_v13, %v806_v54  ;;  %vm810_vm0 = vcmp.eq.s32.totalorder %v1504_v16, %v806_v54 }
  0xcc   : > { %vm811_vm1 = vcmp.eq.s32.totalorder %v1516_v20, %v806_v54  ;;  %v816_v15 = vsel %vm807_vm13, %v815_v26, 0.0  ;;  %v817_v17 = vsel %vm808_vm14, %v815_v26, 0.0  ;;  %v818_v60 = vsel %vm809_vm15, %v815_v26, 0.0 }
  0xcd   : > { %v819_v18 = vsel %vm810_vm0, %v815_v26, 0.0  ;;  %v820_v43 = vsel %vm811_vm1, %v815_v26, 0.0  ;;  %v821_v30 = vadd.f32 %v816_v15, %v798_v50  ;;  %v822_v61 = vadd.f32 %v817_v17, %v799_v29 }
  0xce   : > { %v823_v44 = vadd.f32 %v818_v60, %v800_v51  ;;  %v824_v62 = vadd.f32 %v819_v18, %v801_v52  ;;  %v825_v19 = vadd.f32 %v820_v43, %v802_v53  ;;  %vm830_vm2 = vcmp.eq.s32.totalorder %v1486_v8, %v829_v55 }
  0xcf   : > { %vm831_vm3 = vcmp.eq.s32.totalorder %v1492_v12, %v829_v55  ;;  %vm832_vm4 = vcmp.eq.s32.totalorder %v1495_v13, %v829_v55  ;;  %vm833_vm5 = vcmp.eq.s32.totalorder %v1504_v16, %v829_v55  ;;  %vm834_vm6 = vcmp.eq.s32.totalorder %v1516_v20, %v829_v55 }
  0xd0   : > { %v839_v63 = vsel %vm830_vm2, %v838_v56, 0.0  ;;  %v840_v0 = vsel %vm831_vm3, %v838_v56, 0.0  ;;  %v841_v2 = vsel %vm832_vm4, %v838_v56, 0.0  ;;  %v842_v3 = vsel %vm833_vm5, %v838_v56, 0.0 }
  0xd1   : > { %v843_v14 = vsel %vm834_vm6, %v838_v56, 0.0  ;;  %v844_v4 = vadd.f32 %v839_v63, %v821_v30  ;;  %v845_v5 = vadd.f32 %v840_v0, %v822_v61  ;;  %v846_v6 = vadd.f32 %v841_v2, %v823_v44 }
  0xd2   : > { %v847_v7 = vadd.f32 %v842_v3, %v824_v62  ;;  %v848_v9 = vadd.f32 %v843_v14, %v825_v19  ;;  %vm853_vm7 = vcmp.eq.s32.totalorder %v1486_v8, %v852_v57  ;;  %vm854_vm8 = vcmp.eq.s32.totalorder %v1492_v12, %v852_v57 }
  0xd3   : > { %vm855_vm9 = vcmp.eq.s32.totalorder %v1495_v13, %v852_v57  ;;  %vm856_vm10 = vcmp.eq.s32.totalorder %v1504_v16, %v852_v57  ;;  %vm857_vm11 = vcmp.eq.s32.totalorder %v1516_v20, %v852_v57  ;;  %v862_v21 = vsel %vm853_vm7, %v861_v58, 0.0 }
  0xd4   : > { %v863_v22 = vsel %vm854_vm8, %v861_v58, 0.0  ;;  %v864_v23 = vsel %vm855_vm9, %v861_v58, 0.0  ;;  %v865_v31 = vsel %vm856_vm10, %v861_v58, 0.0  ;;  %v866_v32 = vsel %vm857_vm11, %v861_v58, 0.0 }
  0xd5   : > { %v867_v33 = vadd.f32 %v862_v21, %v844_v4  ;;  %v868_v34 = vadd.f32 %v863_v22, %v845_v5  ;;  %v869_v35 = vadd.f32 %v864_v23, %v846_v6  ;;  %v870_v36 = vadd.f32 %v865_v31, %v847_v7 }
  0xd6   : > { %v871_v37 = vadd.f32 %v866_v32, %v848_v9  ;;  %vm876_vm12 = vcmp.eq.s32.totalorder %v1486_v8, %v875_v11  ;;  %vm877_vm13 = vcmp.eq.s32.totalorder %v1492_v12, %v875_v11  ;;  %vm878_vm14 = vcmp.eq.s32.totalorder %v1495_v13, %v875_v11 }
  0xd7   : > { %vm879_vm15 = vcmp.eq.s32.totalorder %v1504_v16, %v875_v11  ;;  %vm880_vm0 = vcmp.eq.s32.totalorder %v1516_v20, %v875_v11  ;;  %v885_v38 = vsel %vm876_vm12, %v884_v59, 0.0  ;;  %v886_v40 = vsel %vm877_vm13, %v884_v59, 0.0 }
  0xd8   : > { %v887_v25 = vsel %vm878_vm14, %v884_v59, 0.0  ;;  %v888_v39 = vsel %vm879_vm15, %v884_v59, 0.0  ;;  %v889_v41 = vsel %vm880_vm0, %v884_v59, 0.0  ;;  %v890_v42 = vadd.f32 %v885_v38, %v867_v33 }
  0xd9   : > { %v891_v45 = vadd.f32 %v886_v40, %v868_v34  ;;  %v892_v46 = vadd.f32 %v887_v25, %v869_v35  ;;  %v893_v10 = vadd.f32 %v888_v39, %v870_v36  ;;  %v894_v48 = vadd.f32 %v889_v41, %v871_v37 }
  0xda   : > { %v898_v50 = vrot.slane %v1814_v47, %v1527_v24  ;;  %v907_v29 = vrot.slane %v1605_v49, %v1527_v24  ;;  %v921_v51 = vrot.slane %v1814_v47, %v1538_v27  ;;  %v930_v52 = vrot.slane %v1605_v49, %v1538_v27 }
  0xdb   : > { %v944_v53 = vrot.slane %v1814_v47, %v1541_v28  ;;  %v953_v54 = vrot.slane %v1605_v49, %v1541_v28  ;;  %v989_v31 = vand.u32 (!%p1110_p11), 127, %v217_v1 }
  0xdc   : > { %vm899_vm1 = vcmp.eq.s32.totalorder %v1486_v8, %v898_v50  ;;  %vm900_vm2 = vcmp.eq.s32.totalorder %v1492_v12, %v898_v50  ;;  %vm901_vm3 = vcmp.eq.s32.totalorder %v1495_v13, %v898_v50  ;;  %vm902_vm4 = vcmp.eq.s32.totalorder %v1504_v16, %v898_v50 }
  0xdd   : > { %vm903_vm5 = vcmp.eq.s32.totalorder %v1516_v20, %v898_v50  ;;  %v908_v24 = vsel %vm899_vm1, %v907_v29, 0.0  ;;  %v909_v26 = vsel %vm900_vm2, %v907_v29, 0.0  ;;  %v910_v55 = vsel %vm901_vm3, %v907_v29, 0.0 }
  0xde   : > { %v911_v27 = vsel %vm902_vm4, %v907_v29, 0.0  ;;  %v912_v56 = vsel %vm903_vm5, %v907_v29, 0.0  ;;  %v913_v57 = vadd.f32 %v908_v24, %v890_v42  ;;  %v914_v47 = vadd.f32 %v909_v26, %v891_v45 }
  0xdf   : > { %v915_v58 = vadd.f32 %v910_v55, %v892_v46  ;;  %v916_v11 = vadd.f32 %v911_v27, %v893_v10  ;;  %v917_v28 = vadd.f32 %v912_v56, %v894_v48  ;;  %vm922_vm6 = vcmp.eq.s32.totalorder %v1486_v8, %v921_v51 }
  0xe0   : > { %vm923_vm7 = vcmp.eq.s32.totalorder %v1492_v12, %v921_v51  ;;  %vm924_vm8 = vcmp.eq.s32.totalorder %v1495_v13, %v921_v51  ;;  %vm925_vm9 = vcmp.eq.s32.totalorder %v1504_v16, %v921_v51  ;;  %vm926_vm10 = vcmp.eq.s32.totalorder %v1516_v20, %v921_v51 }
  0xe1   : > { %v931_v49 = vsel %vm922_vm6, %v930_v52, 0.0  ;;  %v932_v59 = vsel %vm923_vm7, %v930_v52, 0.0  ;;  %v933_v15 = vsel %vm924_vm8, %v930_v52, 0.0  ;;  %v934_v17 = vsel %vm925_vm9, %v930_v52, 0.0 }
  0xe2   : > { %v935_v60 = vsel %vm926_vm10, %v930_v52, 0.0  ;;  %v936_v18 = vadd.f32 %v931_v49, %v913_v57  ;;  %v937_v43 = vadd.f32 %v932_v59, %v914_v47  ;;  %v938_v30 = vadd.f32 %v933_v15, %v915_v58 }
  0xe3   : > { %v939_v61 = vadd.f32 %v934_v17, %v916_v11  ;;  %v940_v44 = vadd.f32 %v935_v60, %v917_v28  ;;  %vm945_vm11 = vcmp.eq.s32.totalorder %v1486_v8, %v944_v53  ;;  %vm946_vm12 = vcmp.eq.s32.totalorder %v1492_v12, %v944_v53 }
  0xe4   : > { %vm947_vm13 = vcmp.eq.s32.totalorder %v1495_v13, %v944_v53  ;;  %vm948_vm14 = vcmp.eq.s32.totalorder %v1504_v16, %v944_v53  ;;  %vm949_vm15 = vcmp.eq.s32.totalorder %v1516_v20, %v944_v53  ;;  %v954_v62 = vsel %vm945_vm11, %v953_v54, 0.0  ;;  %972 = sbr.rel (%p1110_p11) target bundleno = 426 (0x1aa), region = 44 }
  0xe5   : > { %v955_v19 = vsel %vm946_vm12, %v953_v54, 0.0  ;;  %v956_v63 = vsel %vm947_vm13, %v953_v54, 0.0  ;;  %v957_v0 = vsel %vm948_vm14, %v953_v54, 0.0  ;;  %v958_v2 = vsel %vm949_vm15, %v953_v54, 0.0 }
  0xe6   : > { %v959_v3 = vadd.f32 %v954_v62, %v936_v18  ;;  %v960_v14 = vadd.f32 %v955_v19, %v937_v43  ;;  %v961_v4 = vadd.f32 %v956_v63, %v938_v30  ;;  %v962_v5 = vadd.f32 %v957_v0, %v939_v61 }
  0xe7   : > { %v963_v6 = vadd.f32 %v958_v2, %v940_v44  ;;  %vm990_vm0 = vcmp.eq.s32.totalorder (!%p1110_p11), %v1486_v8, %v989_v31  ;;  %vm991_vm1 = vcmp.eq.s32.totalorder (!%p1110_p11), %v1492_v12, %v989_v31  ;;  %vm992_vm2 = vcmp.eq.s32.totalorder (!%p1110_p11), %v1495_v13, %v989_v31 }
  0xe8   : > { %964 = vst [vmem:[#allocation2] sm:$0xff] %v959_v3  ;;  %965 = vst [vmem:[#allocation2 + $0x8] sm:$0xff] %v960_v14  ;;  %vm993_vm3 = vcmp.eq.s32.totalorder (!%p1110_p11), %v1504_v16, %v989_v31  ;;  %vm994_vm4 = vcmp.eq.s32.totalorder (!%p1110_p11), %v1516_v20, %v989_v31 }
  0xe9   : > { %966 = vst [vmem:[#allocation2 + $0x10] sm:$0xff] %v961_v4  ;;  %967 = vst [vmem:[#allocation2 + $0x18] sm:$0xff] %v962_v5 }
  0xea   : > { %968 = vst [vmem:[#allocation2 + $0x20] sm:$0xff] %v963_v6 }
  0xef   : > { %v973_v7 = vld [vmem:[#allocation2] sm:$0xff]  ;;  %v974_v21 = vld [vmem:[#allocation2 + $0x8] sm:$0xff] }
  0xf0   : > { %v975_v9 = vld [vmem:[#allocation2 + $0x10] sm:$0xff]  ;;  %978 = vadd.xlane.f32.xlu0 %v973_v7  ;;  %v976_v22 = vld [vmem:[#allocation2 + $0x18] sm:$0xff] }
  0xf1   : > { %982 = vadd.xlane.f32.xlu1 %v975_v9  ;;  %v977_v23 = vld [vmem:[#allocation2 + $0x20] sm:$0xff] }
  0xf4   : > { %980 = vadd.xlane.f32.xlu0 %v974_v21 }
  0xf5   : > { %984 = vadd.xlane.f32.xlu1 %v976_v22 }
  0xf8   : > { %986 = vadd.xlane.f32.xlu0 %v977_v23 }
 0x17d   : > { %v979_v32 = vpop.xlane.xlu0 %978 }
 0x17e   : > { %v983_v33 = vpop.xlane.xlu1 %982  ;;  %v995_v36 = vsel %vm990_vm0, %v979_v32, 0.0 }
 0x17f   : > { %v997_v40 = vsel %vm992_vm2, %v983_v33, 0.0 }
 0x181   : > { %v981_v34 = vpop.xlane.xlu0 %980 }
 0x182   : > { %v985_v35 = vpop.xlane.xlu1 %984  ;;  %v996_v37 = vsel %vm991_vm1, %v981_v34, 0.0 }
 0x183   : > { %v1000_v38 = vadd.f32 %v996_v37, %v995_v36  ;;  %v998_v25 = vsel %vm993_vm3, %v985_v35, 0.0 }
 0x185   : > { %v1001_v1 = vadd.f32 %v1000_v38, %v997_v40  ;;  %v987_v39 = vpop.xlane.xlu0 %986 }
 0x186   : > { %v999_v41 = vsel %vm994_vm4, %v987_v39, 0.0 }
 0x187   : > { %v1002_v42 = vadd.f32 %v1001_v1, %v998_v25 }
 0x189   : > { %v1003_v8 = vadd.f32 %v1002_v42, %v999_v41 }
 0x18b   : > { %v1004_v45 = vrot.slane %v1003_v8, 4 }
 0x18d   : > { %v1005_v12 = vadd.f32 %v1004_v45, %v1003_v8 }
 0x18f   : > { %v1006_v46 = vrot.slane %v1005_v12, 2 }
 0x191   : > { %v1007_v13 = vadd.f32 %v1006_v46, %v1005_v12 }
 0x193   : > { %v1008_v10 = vrot.slane %v1007_v13, 1 }
 0x195   : > { %v1009_v48 = vadd.f32 %v1008_v10, %v1007_v13 }
 0x197   : > { %1179 = vrcp.f32 %v1009_v48  ;;  %vm1014_vm5 = vcmp.gt.f32.partialorder %v1009_v48, 0.0 }
 0x1a1   : > { %v1180_v16 = vpop.eup %1179 }
 0x1a2   : > { %v1011_v50 = vmul.f32 %v1180_v16, %v1009_v48 }
 0x1a4   : > { %v1012_v29 = vsub.f32 2.0, %v1011_v50 }
 0x1a6   : > { %v1013_v51 = vmul.f32 %v1180_v16, %v1012_v29 }
 0x1a8   : > { %v1015_v20 = vsel %vm1014_vm5, %v1013_v51, 0.0 }
 0x1a9   : > { %1016 = vst [vmem:[#allocation8] sm:$0x1] %v1015_v20 }
 0x1aa PF: > { %p1133_p3 = scmp.eq.s32.totalorder %s1351_s13, 1  ;;  %s1316_s18 = smov [#allocation8]  }
 0x1ab   : > { %s1024_s16 = sshll.u32 %s1316_s18, 4  ;;  %s1025_s16 = int_to_ptr.vmem [resolvable:$true] %s1024_s16 }
 0x1ac   : > { %s1241_s22 = scalar_lea.vmem %s1025_s16, 16  ;;  %s1247_s29 = scalar_lea.vmem %s1025_s16, 32 }
 0x1ad   : > { %p1242_p6 = scmp.ne.s32.totalorder %s1025_s16, %s1241_s22  ;;  %p1248_p9 = scmp.lt.s32.totalorder %s1025_s16, %s1025_s16 }
 0x1ae   : > { %p1249_p13 = scmp.lt.s32.totalorder %s1247_s29, %s1241_s22 }
 0x1af   : > { %p1243_p1 = pnand %p1242_p6, %p1133_p3 }
 0x1b0   : > { %p1250_p4 = por %p1249_p13, %p1248_p9 }
 0x1b1   : > { %p1244_p2 = pneg %p1243_p1 }
 0x1b3   : > { %p1251_p5 = pnand %p1250_p4, %p1244_p2 }
 0x1b5   : > { %1254 = shalt.err (!%p1251_p5)
}
 0x1b6   : > { %s1255_s24 = scalar_lea.hbm %s1960_s2, 16 }
 0x1b7   : > { %p1256_p10 = scmp.ne.s32.totalorder %s1960_s2, %s1255_s24  ;;  %p1261_p7 = scmp.lt.u32.totalorder %s1255_s24, %s1960_s2 }
 0x1b9   : > { %p1257_p12 = pnand %p1256_p10, %p1133_p3 }
 0x1bb   : > { %p1258_p0 = pneg %p1257_p12 }
 0x1bd   : > { %p1263_p8 = pnand %p1261_p7, %p1258_p0 }
 0x1bf   : > { %1266 = shalt.err (!%p1263_p8)
}
 0x1c0   : > { %1122 = dma.vmem_to_hbm [thread:$0]  (%p1133_p3), %s1025_s16, 16, %s1960_s2, [#allocation5]  }
 0x1c1   : > { %1292 = dma.done.wait (%p1133_p3), [#allocation5], 16  }
 0x1c2   : > { %1294 = vsyncadd (%p1133_p3), [#allocation5], 4294967280 }
 0x1c3 PF: > { %p16_p11 = scmp.ge.s32.totalorder %s1354_s14, 4   ;;  %s1971_s9 = smov %s1301_s10 }
 0x1c4   : > { %s1972_s10 = smov %s1305_s11  ;;  %s1973_s11 = smov %s1364_s17 }
 0x1c5   : > { %s1974_s12 = smov %s1354_s14  ;;  %18 = sbr.rel (!%p16_p11) target bundleno = 6 (0x6), region = 86 }
 0x1cc   :  { %1037 = vsyncpa [#allocation4], 1 }
 0x1cd   :  { %1039 = vsyncpa [#allocation4 + $0x1], 1 }
 0x1ce   :  { %1040 = vsyncpa [#allocation7], 1 }
 0x1cf   :  { %1042 = vsyncpa [#allocation7 + $0x1], 1 }
 0x1d0   :  { %1043 = vsyncpa [#allocation5], 1 }
 0x1d1   :  { %1045 = vsyncpa [#allocation5 + $0x1], 1 }

</bundles_post_ra>
